<compile_context>
chip_gen: v5e
topology: v5e:2x2
jax: 0.10.0
libtpu: 0.0.40
codegen_flags: <defaults>
</compile_context>

<pallas_src>
import numpy as np
import jax
import jax.numpy as jnp
from jax.experimental import pallas as pl
from jax.experimental.pallas import tpu as pltpu


OUT_PAD = 128  # lane-dense output width (multiple of 128)


def encoder_kernel(cat_ref, sub_ref, ind_ref, cont_ref,
                   tcat_ref, tsub_ref, tind_ref,
                   w1c_ref, w1s_ref, w1i_ref, w1x_ref, b1_ref,
                   w2_ref, b2_ref, out_ref):
    tb = cat_ref.shape[0]

    def gather(idx_ref, table_ref):
        # Exact embedding lookup as a one-hot matmul on the MXU (f32 -> exact rows).
        n = table_ref.shape[0]
        iota = jax.lax.broadcasted_iota(jnp.int32, (tb, n), 1)
        onehot = (iota == idx_ref[...]).astype(jnp.float32)
        return jnp.dot(onehot, table_ref[...], preferred_element_type=jnp.float32)

    e_cat = gather(cat_ref, tcat_ref)
    e_sub = gather(sub_ref, tsub_ref)
    e_ind = gather(ind_ref, tind_ref)

    # Linear(3*dim + 3, 4*dim): torch.cat(...) @ W1 == sum of block matmuls.
    # bf16 MXU inputs, f32 accumulation.
    h1 = jnp.dot(e_cat.astype(jnp.bfloat16), w1c_ref[...],
                 preferred_element_type=jnp.float32)
    h1 += jnp.dot(e_sub.astype(jnp.bfloat16), w1s_ref[...],
                  preferred_element_type=jnp.float32)
    h1 += jnp.dot(e_ind.astype(jnp.bfloat16), w1i_ref[...],
                  preferred_element_type=jnp.float32)

    # The 3 continuous scalars: rank-1 VPU updates (f32) instead of a K=3 matmul.
    cont = cont_ref[...]
    h1 += cont[:, 0:1] * w1x_ref[0:1, :]
    h1 += cont[:, 1:2] * w1x_ref[1:2, :]
    h1 += cont[:, 2:3] * w1x_ref[2:3, :]

    h1 = jnp.maximum(h1 + b1_ref[...], 0.0)

    # Linear(4*dim, dim), columns zero-padded to 128 lanes for lane-dense stores.
    out_ref[...] = (jnp.dot(h1.astype(jnp.bfloat16), w2_ref[...],
                            preferred_element_type=jnp.float32) + b2_ref[...])


def project_encoder_forward(cat_idx, sub_idx, ind_idx, cont, kparams, *, tile_b=128):
    """cat/sub/ind_idx: int32 [B]; cont: f32 [B, 3]. Returns f32 [B, dim]."""
    B = cat_idx.shape[0]
    assert B % tile_b == 0, "batch must be a multiple of the batch tile"
    dim = kparams["t_cat"].shape[1]

    cat2 = cat_idx.reshape(B, 1).astype(jnp.int32)
    sub2 = sub_idx.reshape(B, 1).astype(jnp.int32)
    ind2 = ind_idx.reshape(B, 1).astype(jnp.int32)

    args = (cat2, sub2, ind2, cont,
            kparams["t_cat"], kparams["t_sub"], kparams["t_ind"],
            kparams["w1c"], kparams["w1s"], kparams["w1i"], kparams["w1x"],
            kparams["b1"], kparams["w2p"], kparams["b2p"])

    def batch_spec(last):
        return pl.BlockSpec((tile_b, last), lambda i: (i, 0))

    def resident_spec(a):
        # Constant block index -> weights/tables stay VMEM-resident across grid steps.
        return pl.BlockSpec(a.shape, lambda i: (0, 0))

    in_specs = [batch_spec(1), batch_spec(1), batch_spec(1),
                batch_spec(cont.shape[1])] + [resident_spec(a) for a in args[4:]]

    out = pl.pallas_call(
        encoder_kernel,
        out_shape=jax.ShapeDtypeStruct((B, OUT_PAD), jnp.float32),
        grid=(B // tile_b,),
        in_specs=in_specs,
        out_specs=pl.BlockSpec((tile_b, OUT_PAD), lambda i: (i, 0)),
        compiler_params=pltpu.CompilerParams(
            dimension_semantics=("parallel",)),
    )(*args)
    return out[:, :dim]


def init_params(key, len_cat, len_sub, len_ind, dim):
    """f32 parameters mirroring the nn.Module (Linear weights stored as (in, out))."""
    hid = 4 * dim
    in1 = 3 * dim + 3
    ks = jax.random.split(key, 7)
    s1 = 1.0 / np.sqrt(in1)
    s2 = 1.0 / np.sqrt(hid)
    return {
        "t_cat": jax.random.normal(ks[0], (len_cat, dim), jnp.float32),
        "t_sub": jax.random.normal(ks[1], (len_sub, dim), jnp.float32),
        "t_ind": jax.random.normal(ks[2], (len_ind, dim), jnp.float32),
        "w1": jax.random.uniform(ks[3], (in1, hid), jnp.float32, -s1, s1),
        "b1": jax.random.uniform(ks[4], (1, hid), jnp.float32, -s1, s1),
        "w2": jax.random.uniform(ks[5], (hid, dim), jnp.float32, -s2, s2),
        "b2": jax.random.uniform(ks[6], (1, dim), jnp.float32, -s2, s2),
    }


def pack_kernel_params(p):
    """Split W1 per input block, cast MXU weights to bf16, pad output to 128 lanes."""
    dim = p["t_cat"].shape[1]
    hid = p["b1"].shape[-1]
    w1 = p["w1"]
    w2p = jnp.zeros((hid, OUT_PAD), jnp.float32).at[:, :dim].set(p["w2"])
    b2p = jnp.zeros((1, OUT_PAD), jnp.float32).at[:, :dim].set(p["b2"])
    return {
        "t_cat": p["t_cat"], "t_sub": p["t_sub"], "t_ind": p["t_ind"],
        "w1c": w1[0 * dim:1 * dim].astype(jnp.bfloat16),
        "w1s": w1[1 * dim:2 * dim].astype(jnp.bfloat16),
        "w1i": w1[2 * dim:3 * dim].astype(jnp.bfloat16),
        "w1x": w1[3 * dim:],           # (3, hid) kept f32 (applied on the VPU)
        "b1": p["b1"],
        "w2p": w2p.astype(jnp.bfloat16),
        "b2p": b2p,
    }


def reference_forward(cat_idx, sub_idx, ind_idx, cont, p):
    """Pure-JAX f32 reference of the PyTorch forward (for a batch of projects)."""
    x = jnp.concatenate([p["t_cat"][cat_idx], p["t_sub"][sub_idx],
                         p["t_ind"][ind_idx], cont], axis=-1)
    h = jnp.maximum(x @ p["w1"] + p["b1"], 0.0)
    return h @ p["w2"] + p["b2"]


if __name__ == "__main__":
    # TODO(synk): the PyTorch forward encodes one project at a time (scalar
    # indices); here the kernel processes a batch of projects per call, which
    # is the batched equivalent of the same per-row computation.
    B = 256                      # projects per call (tiled 128 rows / grid step)
    DIM = 32                     # embedding_dim
    LEN_CAT, LEN_SUB, LEN_IND = 16, 32, 24

    key = jax.random.PRNGKey(0)
    kp, kc, ks, ki, kx = jax.random.split(key, 5)

    params = init_params(kp, LEN_CAT, LEN_SUB, LEN_IND, DIM)
    kparams = pack_kernel_params(params)

    cat_idx = jax.random.randint(kc, (B,), 0, LEN_CAT, dtype=jnp.int32)
    sub_idx = jax.random.randint(ks, (B,), 0, LEN_SUB, dtype=jnp.int32)
    ind_idx = jax.random.randint(ki, (B,), 0, LEN_IND, dtype=jnp.int32)
    cont = jax.random.uniform(kx, (B, 3), jnp.float32, 0.0, 1.0)

    out = project_encoder_forward(cat_idx, sub_idx, ind_idx, cont, kparams)
    out = jax.block_until_ready(out)

    ref = reference_forward(cat_idx, sub_idx, ind_idx, cont, params)
    assert out.shape == (B, DIM)
    # Loose tolerance: MLP matmuls run with bf16 inputs (f32 accumulation).
    np.testing.assert_allclose(np.asarray(out), np.asarray(ref),
                               atol=1e-1, rtol=1e-1)

    print("KERNEL_OK")
</pallas_src>

<mosaic_0001>
module attributes {stable_mosaic.version = 11 : i64} {
  func.func @encoder_kernel(%arg0: i32, %arg1: memref<128x1xi32, #tpu.memory_space<vmem>>, %arg2: memref<128x1xi32, #tpu.memory_space<vmem>>, %arg3: memref<128x1xi32, #tpu.memory_space<vmem>>, %arg4: memref<128x3xf32, #tpu.memory_space<vmem>>, %arg5: memref<16x32xf32, #tpu.memory_space<vmem>>, %arg6: memref<32x32xf32, #tpu.memory_space<vmem>>, %arg7: memref<24x32xf32, #tpu.memory_space<vmem>>, %arg8: memref<32x128xbf16, #tpu.memory_space<vmem>>, %arg9: memref<32x128xbf16, #tpu.memory_space<vmem>>, %arg10: memref<32x128xbf16, #tpu.memory_space<vmem>>, %arg11: memref<3x128xf32, #tpu.memory_space<vmem>>, %arg12: memref<1x128xf32, #tpu.memory_space<vmem>>, %arg13: memref<128x128xbf16, #tpu.memory_space<vmem>>, %arg14: memref<1x128xf32, #tpu.memory_space<vmem>>, %arg15: memref<128x128xf32, #tpu.memory_space<vmem>>) attributes {dimension_semantics = [#tpu.dimension_semantics<parallel>], iteration_bounds = array<i64: 2>, scalar_prefetch = 0 : i64, scratch_operands = 0 : i64, tpu.core_type = #tpu.core_type<tc>, window_params = [{transform_indices = @transform_0, window_bounds = array<i64: 128, 1>}, {transform_indices = @transform_1, window_bounds = array<i64: 128, 1>}, {transform_indices = @transform_2, window_bounds = array<i64: 128, 1>}, {transform_indices = @transform_3, window_bounds = array<i64: 128, 3>}, {pipeline_mode = #tpu.pipeline_mode<synchronous>, transform_indices = @transform_4, window_bounds = array<i64: 16, 32>}, {pipeline_mode = #tpu.pipeline_mode<synchronous>, transform_indices = @transform_5, window_bounds = array<i64: 32, 32>}, {pipeline_mode = #tpu.pipeline_mode<synchronous>, transform_indices = @transform_6, window_bounds = array<i64: 24, 32>}, {pipeline_mode = #tpu.pipeline_mode<synchronous>, transform_indices = @transform_7, window_bounds = array<i64: 32, 128>}, {pipeline_mode = #tpu.pipeline_mode<synchronous>, transform_indices = @transform_8, window_bounds = array<i64: 32, 128>}, {pipeline_mode = #tpu.pipeline_mode<synchronous>, transform_indices = @transform_9, window_bounds = array<i64: 32, 128>}, {pipeline_mode = #tpu.pipeline_mode<synchronous>, transform_indices = @transform_10, window_bounds = array<i64: 3, 128>}, {pipeline_mode = #tpu.pipeline_mode<synchronous>, transform_indices = @transform_11, window_bounds = array<i64: 1, 128>}, {pipeline_mode = #tpu.pipeline_mode<synchronous>, transform_indices = @transform_12, window_bounds = array<i64: 128, 128>}, {pipeline_mode = #tpu.pipeline_mode<synchronous>, transform_indices = @transform_13, window_bounds = array<i64: 1, 128>}, {transform_indices = @transform_14, window_bounds = array<i64: 128, 128>}]} {
    %0 = tpu.iota {dimensions = array<i32: 1>} : vector<128x16xi32>
    %c0 = arith.constant 0 : index
    %c0_0 = arith.constant 0 : index
    %1 = vector.load %arg1[%c0, %c0_0] : memref<128x1xi32, #tpu.memory_space<vmem>>, vector<128x1xi32>
    %2 = vector.broadcast %1 : vector<128x1xi32> to vector<128x16xi32>
    %3 = arith.cmpi eq, %0, %2 : vector<128x16xi32>
    %4 = arith.extui %3 : vector<128x16xi1> to vector<128x16xi32>
    %5 = arith.sitofp %4 : vector<128x16xi32> to vector<128x16xf32>
    %c0_1 = arith.constant 0 : index
    %c0_2 = arith.constant 0 : index
    %6 = vector.load %arg5[%c0_1, %c0_2] : memref<16x32xf32, #tpu.memory_space<vmem>>, vector<16x32xf32>
    %cst = arith.constant dense<0.000000e+00> : vector<128x32xf32>
    %7 = tpu.matmul %5, %6, %cst {dimension_numbers = #tpu.dot_dimension_numbers<[1], [0], [0], [1], [0, 0, 1, 1], [], []>} : vector<128x16xf32>, vector<16x32xf32>, vector<128x32xf32> -> vector<128x32xf32>
    %8 = tpu.iota {dimensions = array<i32: 1>} : vector<128x32xi32>
    %c0_3 = arith.constant 0 : index
    %c0_4 = arith.constant 0 : index
    %9 = vector.load %arg2[%c0_3, %c0_4] : memref<128x1xi32, #tpu.memory_space<vmem>>, vector<128x1xi32>
    %10 = vector.broadcast %9 : vector<128x1xi32> to vector<128x32xi32>
    %11 = arith.cmpi eq, %8, %10 : vector<128x32xi32>
    %12 = arith.extui %11 : vector<128x32xi1> to vector<128x32xi32>
    %13 = arith.sitofp %12 : vector<128x32xi32> to vector<128x32xf32>
    %c0_5 = arith.constant 0 : index
    %c0_6 = arith.constant 0 : index
    %14 = vector.load %arg6[%c0_5, %c0_6] : memref<32x32xf32, #tpu.memory_space<vmem>>, vector<32x32xf32>
    %cst_7 = arith.constant dense<0.000000e+00> : vector<128x32xf32>
    %15 = tpu.matmul %13, %14, %cst_7 {dimension_numbers = #tpu.dot_dimension_numbers<[1], [0], [0], [1], [0, 0, 1, 1], [], []>} : vector<128x32xf32>, vector<32x32xf32>, vector<128x32xf32> -> vector<128x32xf32>
    %16 = tpu.iota {dimensions = array<i32: 1>} : vector<128x24xi32>
    %c0_8 = arith.constant 0 : index
    %c0_9 = arith.constant 0 : index
    %17 = vector.load %arg3[%c0_8, %c0_9] : memref<128x1xi32, #tpu.memory_space<vmem>>, vector<128x1xi32>
    %18 = vector.broadcast %17 : vector<128x1xi32> to vector<128x24xi32>
    %19 = arith.cmpi eq, %16, %18 : vector<128x24xi32>
    %20 = arith.extui %19 : vector<128x24xi1> to vector<128x24xi32>
    %21 = arith.sitofp %20 : vector<128x24xi32> to vector<128x24xf32>
    %c0_10 = arith.constant 0 : index
    %c0_11 = arith.constant 0 : index
    %22 = vector.load %arg7[%c0_10, %c0_11] : memref<24x32xf32, #tpu.memory_space<vmem>>, vector<24x32xf32>
    %cst_12 = arith.constant dense<0.000000e+00> : vector<128x32xf32>
    %23 = tpu.matmul %21, %22, %cst_12 {dimension_numbers = #tpu.dot_dimension_numbers<[1], [0], [0], [1], [0, 0, 1, 1], [], []>} : vector<128x24xf32>, vector<24x32xf32>, vector<128x32xf32> -> vector<128x32xf32>
    %24 = arith.truncf %7 : vector<128x32xf32> to vector<128x32xbf16>
    %c0_13 = arith.constant 0 : index
    %c0_14 = arith.constant 0 : index
    %25 = vector.load %arg8[%c0_13, %c0_14] : memref<32x128xbf16, #tpu.memory_space<vmem>>, vector<32x128xbf16>
    %cst_15 = arith.constant dense<0.000000e+00> : vector<128x128xf32>
    %26 = tpu.matmul %24, %25, %cst_15 {dimension_numbers = #tpu.dot_dimension_numbers<[1], [0], [0], [1], [0, 0, 1, 1], [], []>} : vector<128x32xbf16>, vector<32x128xbf16>, vector<128x128xf32> -> vector<128x128xf32>
    %27 = arith.truncf %15 : vector<128x32xf32> to vector<128x32xbf16>
    %c0_16 = arith.constant 0 : index
    %c0_17 = arith.constant 0 : index
    %28 = vector.load %arg9[%c0_16, %c0_17] : memref<32x128xbf16, #tpu.memory_space<vmem>>, vector<32x128xbf16>
    %cst_18 = arith.constant dense<0.000000e+00> : vector<128x128xf32>
    %29 = tpu.matmul %27, %28, %cst_18 {dimension_numbers = #tpu.dot_dimension_numbers<[1], [0], [0], [1], [0, 0, 1, 1], [], []>} : vector<128x32xbf16>, vector<32x128xbf16>, vector<128x128xf32> -> vector<128x128xf32>
    %30 = arith.addf %26, %29 : vector<128x128xf32>
    %31 = arith.truncf %23 : vector<128x32xf32> to vector<128x32xbf16>
    %c0_19 = arith.constant 0 : index
    %c0_20 = arith.constant 0 : index
    %32 = vector.load %arg10[%c0_19, %c0_20] : memref<32x128xbf16, #tpu.memory_space<vmem>>, vector<32x128xbf16>
    %cst_21 = arith.constant dense<0.000000e+00> : vector<128x128xf32>
    %33 = tpu.matmul %31, %32, %cst_21 {dimension_numbers = #tpu.dot_dimension_numbers<[1], [0], [0], [1], [0, 0, 1, 1], [], []>} : vector<128x32xbf16>, vector<32x128xbf16>, vector<128x128xf32> -> vector<128x128xf32>
    %34 = arith.addf %30, %33 : vector<128x128xf32>
    %c0_22 = arith.constant 0 : index
    %c0_23 = arith.constant 0 : index
    %35 = vector.load %arg4[%c0_22, %c0_23] : memref<128x3xf32, #tpu.memory_space<vmem>>, vector<128x3xf32>
    %36 = vector.extract_strided_slice %35 {offsets = [0, 0], sizes = [128, 1], strides = [1, 1]} : vector<128x3xf32> to vector<128x1xf32>
    %c0_24 = arith.constant 0 : index
    %c0_25 = arith.constant 0 : index
    %37 = vector.load %arg11[%c0_24, %c0_25] : memref<3x128xf32, #tpu.memory_space<vmem>>, vector<1x128xf32>
    %38 = vector.broadcast %36 : vector<128x1xf32> to vector<128x128xf32>
    %39 = vector.broadcast %37 : vector<1x128xf32> to vector<128x128xf32>
    %40 = arith.mulf %38, %39 : vector<128x128xf32>
    %41 = arith.addf %34, %40 : vector<128x128xf32>
    %42 = vector.extract_strided_slice %35 {offsets = [0, 1], sizes = [128, 1], strides = [1, 1]} : vector<128x3xf32> to vector<128x1xf32>
    %c1 = arith.constant 1 : index
    %c0_26 = arith.constant 0 : index
    %43 = vector.load %arg11[%c1, %c0_26] : memref<3x128xf32, #tpu.memory_space<vmem>>, vector<1x128xf32>
    %44 = vector.broadcast %42 : vector<128x1xf32> to vector<128x128xf32>
    %45 = vector.broadcast %43 : vector<1x128xf32> to vector<128x128xf32>
    %46 = arith.mulf %44, %45 : vector<128x128xf32>
    %47 = arith.addf %41, %46 : vector<128x128xf32>
    %48 = vector.extract_strided_slice %35 {offsets = [0, 2], sizes = [128, 1], strides = [1, 1]} : vector<128x3xf32> to vector<128x1xf32>
    %c2 = arith.constant 2 : index
    %c0_27 = arith.constant 0 : index
    %49 = vector.load %arg11[%c2, %c0_27] : memref<3x128xf32, #tpu.memory_space<vmem>>, vector<1x128xf32>
    %50 = vector.broadcast %48 : vector<128x1xf32> to vector<128x128xf32>
    %51 = vector.broadcast %49 : vector<1x128xf32> to vector<128x128xf32>
    %52 = arith.mulf %50, %51 : vector<128x128xf32>
    %53 = arith.addf %47, %52 : vector<128x128xf32>
    %c0_28 = arith.constant 0 : index
    %c0_29 = arith.constant 0 : index
    %54 = vector.load %arg12[%c0_28, %c0_29] : memref<1x128xf32, #tpu.memory_space<vmem>>, vector<1x128xf32>
    %55 = vector.broadcast %54 : vector<1x128xf32> to vector<128x128xf32>
    %56 = arith.addf %53, %55 : vector<128x128xf32>
    %cst_30 = arith.constant 0.000000e+00 : f32
    %57 = vector.broadcast %cst_30 : f32 to vector<128x128xf32>
    %58 = arith.maximumf %56, %57 : vector<128x128xf32>
    %59 = arith.truncf %58 : vector<128x128xf32> to vector<128x128xbf16>
    %c0_31 = arith.constant 0 : index
    %c0_32 = arith.constant 0 : index
    %60 = vector.load %arg13[%c0_31, %c0_32] : memref<128x128xbf16, #tpu.memory_space<vmem>>, vector<128x128xbf16>
    %cst_33 = arith.constant dense<0.000000e+00> : vector<128x128xf32>
    %61 = tpu.matmul %59, %60, %cst_33 {dimension_numbers = #tpu.dot_dimension_numbers<[1], [0], [0], [1], [0, 0, 1, 1], [], []>} : vector<128x128xbf16>, vector<128x128xbf16>, vector<128x128xf32> -> vector<128x128xf32>
    %c0_34 = arith.constant 0 : index
    %c0_35 = arith.constant 0 : index
    %62 = vector.load %arg14[%c0_34, %c0_35] : memref<1x128xf32, #tpu.memory_space<vmem>>, vector<1x128xf32>
    %63 = vector.broadcast %62 : vector<1x128xf32> to vector<128x128xf32>
    %64 = arith.addf %61, %63 : vector<128x128xf32>
    %c0_36 = arith.constant 0 : index
    %c0_37 = arith.constant 0 : index
    %65 = vector.load %arg15[%c0_36, %c0_37] : memref<128x128xf32, #tpu.memory_space<vmem>>, vector<128x128xf32>
    tpu.vector_store %arg15[%c0_36, %c0_37], %64 {strides = array<i32>} : memref<128x128xf32, #tpu.memory_space<vmem>>, vector<128x128xf32>,
    return
  }
  func.func @transform_0(%arg0: i32) -> (i32, i32) {
    %c0_i32 = arith.constant 0 : i32
    %c0_i32_0 = arith.constant 0 : i32
    return %arg0, %c0_i32 : i32, i32
  }
  func.func @transform_1(%arg0: i32) -> (i32, i32) {
    %c0_i32 = arith.constant 0 : i32
    %c0_i32_0 = arith.constant 0 : i32
    return %arg0, %c0_i32 : i32, i32
  }
  func.func @transform_2(%arg0: i32) -> (i32, i32) {
    %c0_i32 = arith.constant 0 : i32
    %c0_i32_0 = arith.constant 0 : i32
    return %arg0, %c0_i32 : i32, i32
  }
  func.func @transform_3(%arg0: i32) -> (i32, i32) {
    %c0_i32 = arith.constant 0 : i32
    %c0_i32_0 = arith.constant 0 : i32
    return %arg0, %c0_i32 : i32, i32
  }
  func.func @transform_4(%arg0: i32) -> (i32, i32) {
    %c0_i32 = arith.constant 0 : i32
    %c0_i32_0 = arith.constant 0 : i32
    %c0_i32_1 = arith.constant 0 : i32
    return %c0_i32, %c0_i32_0 : i32, i32
  }
  func.func @transform_5(%arg0: i32) -> (i32, i32) {
    %c0_i32 = arith.constant 0 : i32
    %c0_i32_0 = arith.constant 0 : i32
    %c0_i32_1 = arith.constant 0 : i32
    return %c0_i32, %c0_i32_0 : i32, i32
  }
  func.func @transform_6(%arg0: i32) -> (i32, i32) {
    %c0_i32 = arith.constant 0 : i32
    %c0_i32_0 = arith.constant 0 : i32
    %c0_i32_1 = arith.constant 0 : i32
    return %c0_i32, %c0_i32_0 : i32, i32
  }
  func.func @transform_7(%arg0: i32) -> (i32, i32) {
    %c0_i32 = arith.constant 0 : i32
    %c0_i32_0 = arith.constant 0 : i32
    %c0_i32_1 = arith.constant 0 : i32
    return %c0_i32, %c0_i32_0 : i32, i32
  }
  func.func @transform_8(%arg0: i32) -> (i32, i32) {
    %c0_i32 = arith.constant 0 : i32
    %c0_i32_0 = arith.constant 0 : i32
    %c0_i32_1 = arith.constant 0 : i32
    return %c0_i32, %c0_i32_0 : i32, i32
  }
  func.func @transform_9(%arg0: i32) -> (i32, i32) {
    %c0_i32 = arith.constant 0 : i32
    %c0_i32_0 = arith.constant 0 : i32
    %c0_i32_1 = arith.constant 0 : i32
    return %c0_i32, %c0_i32_0 : i32, i32
  }
  func.func @transform_10(%arg0: i32) -> (i32, i32) {
    %c0_i32 = arith.constant 0 : i32
    %c0_i32_0 = arith.constant 0 : i32
    %c0_i32_1 = arith.constant 0 : i32
    return %c0_i32, %c0_i32_0 : i32, i32
  }
  func.func @transform_11(%arg0: i32) -> (i32, i32) {
    %c0_i32 = arith.constant 0 : i32
    %c0_i32_0 = arith.constant 0 : i32
    %c0_i32_1 = arith.constant 0 : i32
    return %c0_i32, %c0_i32_0 : i32, i32
  }
  func.func @transform_12(%arg0: i32) -> (i32, i32) {
    %c0_i32 = arith.constant 0 : i32
    %c0_i32_0 = arith.constant 0 : i32
    %c0_i32_1 = arith.constant 0 : i32
    return %c0_i32, %c0_i32_0 : i32, i32
  }
  func.func @transform_13(%arg0: i32) -> (i32, i32) {
    %c0_i32 = arith.constant 0 : i32
    %c0_i32_0 = arith.constant 0 : i32
    %c0_i32_1 = arith.constant 0 : i32
    return %c0_i32, %c0_i32_0 : i32, i32
  }
  func.func @transform_14(%arg0: i32) -> (i32, i32) {
    %c0_i32 = arith.constant 0 : i32
    %c0_i32_0 = arith.constant 0 : i32
    return %arg0, %c0_i32 : i32, i32
  }
}

</mosaic_0001>

<bundles_post_ra>
// kernel: tpu_custom_call.1
= control target key start
LH: loop header
LB: loop body
LE: loop exit
PB: predicated region body
PF: predicated region fallthrough
CT: control target
= control target key end

     0   :  { %s3263_s0 = inlined_call_operand.vmem [shape: s32[256,1], index: 0, kind: input, shape index: {}]   ;;  %s3264_s1 = inlined_call_operand.vmem [shape: s32[256,1], index: 1, kind: input, shape index: {}]   ;;  %s3265_s2 = inlined_call_operand.vmem [shape: s32[256,1], index: 2, kind: input, shape index: {}]   ;;  %s3266_s3 = inlined_call_operand.vmem [shape: f32[256,3], index: 3, kind: input, shape index: {}]   ;;  %s3267_s4 = inlined_call_operand.vmem [shape: f32[16,32], index: 4, kind: input, shape index: {}]   ;;  %s3268_s5 = inlined_call_operand.vmem [shape: f32[32,32], index: 5, kind: input, shape index: {}]   ;;  %s3269_s6 = inlined_call_operand.vmem [shape: f32[24,32], index: 6, kind: input, shape index: {}]   ;;  %s3270_s7 = inlined_call_operand.vmem [shape: bf16[32,128], index: 7, kind: input, shape index: {}]   ;;  %s3271_s8 = inlined_call_operand.vmem [shape: bf16[32,128], index: 8, kind: input, shape index: {}]   ;;  %s3272_s9 = inlined_call_operand.vmem [shape: bf16[32,128], index: 9, kind: input, shape index: {}]   ;;  %s3273_s10 = inlined_call_operand.vmem [shape: f32[3,128], index: 10, kind: input, shape index: {}]   ;;  %s3274_s11 = inlined_call_operand.vmem [shape: f32[1,128], index: 11, kind: input, shape index: {}]   ;;  %s3275_s12 = inlined_call_operand.vmem [shape: bf16[128,128], index: 12, kind: input, shape index: {}]   ;;  %s3276_s13 = inlined_call_operand.vmem [shape: f32[1,128], index: 13, kind: input, shape index: {}]   ;;  %s3277_s14 = inlined_call_operand.hbm [shape: f32[256,128], index: 14, kind: output, shape index: {}]  }
   0x1   :  { %3278 = sst [smem:[#allocation6_spill]] %s3263_s0 }
   0x2   :  { %3279 = sst [smem:[#allocation7_spill]] %s3264_s1 }
   0x3   :  { %3280 = sst [smem:[#allocation8_spill]] %s3265_s2 }
   0x4   :  { %19 = vsyncpa [#allocation3], 0 }
   0x5   :  { %21 = vsyncpa [#allocation3 + $0x1], 0  ;;  %s2607_s29 = smov 0   ;;  %s2609_s30 = smov 0  }
   0x6   :  { %s2611_s15 = smov 0   ;;  %s2613_s16 = smov 0  }
   0x7 LB: > { %s2628_s17 = sadd.s32 4294967295, %s2524_s16   ;;  %s2149_s18 = sadd.s32 4294967294, %s2524_s16   ;;  %s2524_s16 = sphi %s2613_s16, %s3291_s16   ;;  %s2520_s15 = sphi %s2611_s15, %s3290_s15   ;;  %s2516_s30 = sphi %s2609_s30, %s3289_s30   ;;  %s2512_s29 = sphi %s2607_s29, %s3288_s29  }
   0x8   : > { %s2632_s19 = sadd.s32 1, %s2524_s16   ;;  %s348_s20 = sadd.s32 1, %s2520_s15 }
   0x9   : > { %s345_s21 = ssub.s32 %s2524_s16, %s2632_s19  ;;  %p358_p0 = scmp.ne.s32.totalorder %s2520_s15, %s2516_s30 }
   0xa   : > { %p346_p1 = scmp.eq.s32.totalorder %s345_s21, 0  ;;  %p359_p2 = scmp.eq.s32.totalorder %s2628_s17, 1 }
   0xb   : > { %p364_p3 = scmp.ne.s32.totalorder %s2516_s30, %s2512_s29  ;;  %p365_p4 = scmp.eq.s32.totalorder %s2149_s18, 1 }
   0xc   : > { %s2643_s22 = scalar_select %p346_p1, %s2520_s15, %s348_s20  }
   0xd   : > { %p2645_p5 = por %p359_p2, %p358_p0  ;;  %p2649_p6 = por %p365_p4, %p364_p3 }
   0xe   : > { %3281 = sst [smem:[#allocation5_spill]] %s2643_s22  ;;  %p2152_p7 = scmp.ge.s32.totalorder %s2524_s16, 1 }
   0xf   : > { %p449_p8 = scmp.lt.s32.totalorder %s2524_s16, 3 }
  0x11   : > { %p450_p9 = pnand %p2152_p7, %p449_p8 }
  0x12   : > { %s2154_s25 = sshll.u32 (!%p450_p9), %s2628_s17, 4  ;;  %s3284_s1 = sld [smem:[#allocation7_spill]] (!%p450_p9) }
  0x13   : > { %453 = sbr.rel (%p450_p9) target bundleno = 744 (0x2e8), region = 76  ;;  %p511_p10 = scmp.lt.s32.totalorder (!%p450_p9), %s2154_s25, 31 }
  0x14   : > { %s3285_s0 = sld [smem:[#allocation6_spill]] (!%p450_p9) }
  0x15   : > { %s3286_s2 = sld [smem:[#allocation8_spill]] (!%p450_p9) }
  0x18   : > { %v2526_v0 = vmov 0   ;;  %s3293_s25 = smov (!%p511_p10, %s2154_s25), 31  ;;  %v651_v34 = vld [vmem:[%s3267_s4 + $0x8] sm:$0xff]  ;;  %v650_v35 = vld [vmem:[%s3267_s4] sm:$0xff]  ;;  %v881_v39 = vld [vmem:[%s3268_s5 + $0x18] sm:$0xff]  ;;  %v536_v47 = vlaneseq  ;;  %v2527_v54 = vmov 0.0  }
  0x19   : > { %2414 = vset.pattern.permute.xlu2 %v2526_v0  ;;  %2413 = vset.pattern.permute.xlu1 %v2526_v0  ;;  %s2659_s26 = sshll.u32 %s3293_s25, 3  ;;  %v880_v43 = vld [vmem:[%s3268_s5 + $0x10] sm:$0xff]  ;;  %v879_v45 = vld [vmem:[%s3268_s5 + $0x8] sm:$0xff]  ;;  %v878_v51 = vld [vmem:[%s3268_s5] sm:$0xff]  ;;  %vm652_vm1 = vcmask 130048   ;;  %vm882_vm7 = vcmask 261120  }
  0x1a   : > { %2412 = vset.pattern.permute.xlu0 %v2526_v0  ;;  %s2665_s18 = scalar_lea.vmem %s3284_s1, %s2659_s26  ;;  %s2671_s22 = scalar_lea.vmem %s3285_s0, %s2659_s26  ;;  %2358 = vmatpush.msra.mxu1 %v651_v34  ;;  %v2743_v52 = vand.u32 127, %v536_v47  ;;  %v1110_v59 = vld [vmem:[%s3269_s6 + $0x10] sm:$0xff]  ;;  %vm1111_vm15 = vcmask 195584   ;;  %v2344_v47 = vld [vmem:[%s3270_s7 + $0x8] sm:$0xff] }
  0x1b   : > { %v767_v1 = vld [vmem:[%s2665_s18 + $0x8] sm:$0xff]  ;;  %v553_v2 = vld [vmem:[%s2671_s22 + $0x78] sm:$0xff]  ;;  %v768_v4 = vld [vmem:[%s2665_s18 + $0x10] sm:$0xff]  ;;  %s2683_s28 = scalar_lea.vmem %s3286_s2, %s2659_s26  ;;  %715 = vmatpush.msra.mxu0 %v651_v34  ;;  %2360 = vmatpush.msra.mxu3 %v881_v39  ;;  %s2769_s20 = scalar_lea.vmem %s3266_s3, %s2659_s26 }
  0x1c   : > { %v551_v3 = vld [vmem:[%s2671_s22 + $0x68] sm:$0xff]  ;;  %786 = vperm.xlu2 %2414, %v767_v1   ;;  %600 = vperm.xlu1 %2413, %v553_v2   ;;  %v766_v5 = vld [vmem:[%s2665_s18] sm:$0xff]  ;;  %v552_v6 = vld [vmem:[%s2671_s22 + $0x70] sm:$0xff]  ;;  %s2357_s0 = sshll.u32 %s2628_s17, 7 }
  0x1d   : > { %594 = vperm.xlu0 %2412, %v551_v3   ;;  %v996_v7 = vld [vmem:[%s2683_s28] sm:$0xff]  ;;  %v769_v9 = vld [vmem:[%s2665_s18 + $0x18] sm:$0xff]  ;;  %v539_v10 = vld [vmem:[%s2671_s22 + $0x8] sm:$0xff]  ;;  %2359 = vmatpush.msra.mxu1 %v650_v35 }
  0x1e   : > { %v538_v8 = vld [vmem:[%s2671_s22] sm:$0xff]  ;;  %v998_v11 = vld [vmem:[%s2683_s28 + $0x10] sm:$0xff]  ;;  %v997_v12 = vld [vmem:[%s2683_s28 + $0x8] sm:$0xff]  ;;  %716 = vmatpush.msra.mxu0 %v650_v35  ;;  %2361 = vmatpush.msra.mxu3 %v880_v43 }
  0x1f   : > { %v770_v13 = vld [vmem:[%s2665_s18 + $0x20] sm:$0xff]  ;;  %v999_v14 = vld [vmem:[%s2683_s28 + $0x18] sm:$0xff]  ;;  %v540_v15 = vld [vmem:[%s2671_s22 + $0x10] sm:$0xff]  ;;  %943 = vmatpush.msrb.mxu1 %v881_v39  ;;  %2364 = vmatpush.msra.mxu2 %v1110_v59 }
  0x20   : > { %v541_v16 = vld [vmem:[%s2671_s22 + $0x18] sm:$0xff]  ;;  %v771_v17 = vld [vmem:[%s2665_s18 + $0x28] sm:$0xff]  ;;  %v1000_v18 = vld [vmem:[%s2683_s28 + $0x20] sm:$0xff]  ;;  %2362 = vmatpush.msra.mxu3 %v879_v45  ;;  %1376 = vmatpush.bf16.msrb.mxu0 %v2344_v47 }
  0x21   : > { %v542_v19 = vld [vmem:[%s2671_s22 + $0x20] sm:$0xff]  ;;  %v772_v20 = vld [vmem:[%s2665_s18 + $0x30] sm:$0xff]  ;;  %v1001_v21 = vld [vmem:[%s2683_s28 + $0x28] sm:$0xff]  ;;  %944 = vmatpush.msrb.mxu1 %v880_v43 }
  0x22   : > { %v543_v22 = vld [vmem:[%s2671_s22 + $0x28] sm:$0xff]  ;;  %v773_v23 = vld [vmem:[%s2665_s18 + $0x38] sm:$0xff]  ;;  %v1002_v24 = vld [vmem:[%s2683_s28 + $0x30] sm:$0xff]  ;;  %2363 = vmatpush.msra.mxu3 %v878_v51 }
  0x23   : > { %v544_v25 = vld [vmem:[%s2671_s22 + $0x30] sm:$0xff]  ;;  %v774_v26 = vld [vmem:[%s2665_s18 + $0x40] sm:$0xff]  ;;  %v1003_v27 = vld [vmem:[%s2683_s28 + $0x38] sm:$0xff]  ;;  %945 = vmatpush.msrb.mxu1 %v879_v45 }
  0x24   : > { %789 = vperm.xlu2 %2414, %v768_v4   ;;  %783 = vperm.xlu1 %2413, %v766_v5   ;;  %v545_v28 = vld [vmem:[%s2671_s22 + $0x38] sm:$0xff]  ;;  %v775_v29 = vld [vmem:[%s2665_s18 + $0x48] sm:$0xff]  ;;  %v1004_v30 = vld [vmem:[%s2683_s28 + $0x40] sm:$0xff] }
  0x25   : > { %597 = vperm.xlu0 %2412, %v552_v6   ;;  %v546_v31 = vld [vmem:[%s2671_s22 + $0x40] sm:$0xff]  ;;  %v776_v32 = vld [vmem:[%s2665_s18 + $0x50] sm:$0xff]  ;;  %v1005_v33 = vld [vmem:[%s2683_s28 + $0x48] sm:$0xff]  ;;  %946 = vmatpush.msrb.mxu1 %v878_v51 }
  0x26   : > { %v547_v36 = vld [vmem:[%s2671_s22 + $0x48] sm:$0xff]  ;;  %v777_v37 = vld [vmem:[%s2665_s18 + $0x58] sm:$0xff]  ;;  %v1006_v38 = vld [vmem:[%s2683_s28 + $0x50] sm:$0xff] }
  0x27   : > { %v548_v41 = vld [vmem:[%s2671_s22 + $0x50] sm:$0xff]  ;;  %v778_v42 = vld [vmem:[%s2665_s18 + $0x60] sm:$0xff]  ;;  %v1007_v44 = vld [vmem:[%s2683_s28 + $0x58] sm:$0xff] }
  0x28   : > { %v549_v48 = vld [vmem:[%s2671_s22 + $0x58] sm:$0xff]  ;;  %v779_v49 = vld [vmem:[%s2665_s18 + $0x68] sm:$0xff]  ;;  %v1008_v50 = vld [vmem:[%s2683_s28 + $0x60] sm:$0xff] }
  0x29   : > { %v780_v56 = vld [vmem:[%s2665_s18 + $0x70] sm:$0xff]  ;;  %v1009_v58 = vld [vmem:[%s2683_s28 + $0x68] sm:$0xff]  ;;  %v781_v1 = vld [vmem:[%s2665_s18 + $0x78] sm:$0xff] }
  0x2a   : > { %v1010_v57 = vld [vmem:[%s2683_s28 + $0x70] sm:$0xff]  ;;  %v1011_v2 = vld [vmem:[%s2683_s28 + $0x78] sm:$0xff]  ;;  %v550_v3 = vld [vmem:[%s2671_s22 + $0x60] sm:$0xff]  ;;  %s507_s22 = sand.u32 1, %s2516_s30  }
  0x2b   : > { %v1109_v4 = vld [vmem:[%s3269_s6 + $0x8] sm:$0xff]  ;;  %s2153_s18 = sshll.u32 %s507_s22, 7  ;;  %s2036_s26 = scalar_lea.sflag [#allocation3], %s507_s22 }
  0x2c   : > { %1013 = vperm.xlu1 %2413, %v996_v7   ;;  %555 = vperm.xlu2 %2414, %v538_v8   ;;  %v1108_v8 = vld [vmem:[%s3269_s6] sm:$0xff]  ;;  %s3211_s21 = scalar_lea.vmem [#allocation2], %s2153_s18 }
  0x2d   : > { %792 = vperm.xlu0 %2412, %v769_v9   ;;  %2365 = vmatpush.msra.mxu2 %v1109_v4  ;;  %s2048_s27 = sshll.u32 %s3211_s21, 4  ;;  %s2049_s27 = int_to_ptr.vmem [resolvable:$true] %s2048_s27 }
  0x2f   : > { %2366 = vmatpush.msra.mxu2 %v1108_v8 }
  0x34   : > { %558 = vperm.xlu1 %2413, %v539_v10   ;;  %1019 = vperm.xlu2 %2414, %v998_v11   ;;  %v2779_v10 = vld [vmem:[%s2769_s20 + $0x8] sm:$0xff]  ;;  %v2783_v11 = vld [vmem:[%s2769_s20] sm:$0xff] }
  0x35   : > { %1016 = vperm.xlu0 %2412, %v997_v12  }
  0x3c   : > { %795 = vperm.xlu1 %2413, %v770_v13   ;;  %1022 = vperm.xlu2 %2414, %v999_v14  }
  0x3d   : > { %561 = vperm.xlu0 %2412, %v540_v15  }
  0x44   : > { %564 = vperm.xlu1 %2413, %v541_v16   ;;  %798 = vperm.xlu2 %2414, %v771_v17  }
  0x45   : > { %1025 = vperm.xlu0 %2412, %v1000_v18  }
  0x4c   : > { %567 = vperm.xlu1 %2413, %v542_v19   ;;  %801 = vperm.xlu2 %2414, %v772_v20  }
  0x4d   : > { %1028 = vperm.xlu0 %2412, %v1001_v21  }
  0x54   : > { %570 = vperm.xlu1 %2413, %v543_v22   ;;  %804 = vperm.xlu2 %2414, %v773_v23  }
  0x55   : > { %1031 = vperm.xlu0 %2412, %v1002_v24  }
  0x5c   : > { %573 = vperm.xlu1 %2413, %v544_v25   ;;  %807 = vperm.xlu2 %2414, %v774_v26  }
  0x5d   : > { %1034 = vperm.xlu0 %2412, %v1003_v27  }
  0x64   : > { %576 = vperm.xlu1 %2413, %v545_v28   ;;  %810 = vperm.xlu2 %2414, %v775_v29  }
  0x65   : > { %1037 = vperm.xlu0 %2412, %v1004_v30  }
  0x6c   : > { %579 = vperm.xlu1 %2413, %v546_v31   ;;  %813 = vperm.xlu2 %2414, %v776_v32  }
  0x6d   : > { %1040 = vperm.xlu0 %2412, %v1005_v33  }
  0x74   : > { %582 = vperm.xlu1 %2413, %v547_v36   ;;  %816 = vperm.xlu2 %2414, %v777_v37  }
  0x75   : > { %1043 = vperm.xlu0 %2412, %v1006_v38  }
  0x76   : > { %v2724_v40 = vpop.permute.xlu2 %786 }
  0x77   : > { %vm831_vm8 = vcmp.eq.s32.totalorder %v2743_v52, %v2724_v40 }
  0x78   : > { %v2195_v22 = vsel %vm831_vm8, 1.0, %v2527_v54 }
  0x7c   : > { %585 = vperm.xlu1 %2413, %v548_v41   ;;  %819 = vperm.xlu2 %2414, %v778_v42  }
  0x7d   : > { %1046 = vperm.xlu0 %2412, %v1007_v44  }
  0x7e   : > { %v2735_v46 = vpop.permute.xlu2 %789 }
  0x7f   : > { %vm832_vm12 = vcmp.eq.s32.totalorder %v2743_v52, %v2735_v46 }
  0x80   : > { %v2196_v31 = vsel %vm832_vm12, 1.0, %v2527_v54 }
  0x84   : > { %588 = vperm.xlu1 %2413, %v549_v48   ;;  %822 = vperm.xlu2 %2414, %v779_v49  }
  0x85   : > { %1049 = vperm.xlu0 %2412, %v1008_v50  }
  0x86   : > { %v556_v53 = vpop.permute.xlu2 %555 }
  0x87   : > { %vm602_vm0 = vcmp.eq.s32.totalorder %v2743_v52, %v556_v53 }
  0x88   : > { %v2162_v55 = vsel %vm602_vm0, 1.0, %v2527_v54 }
  0x89   : > { %2178 = vmatmul.msk.f32.vlgmr.msra.gmra.mxu0 %vm652_vm1, %v2162_v55 }
  0x8c   : > { %825 = vperm.xlu1 %2413, %v780_v56   ;;  %1055 = vperm.xlu2 %2414, %v1010_v57   ;;  %v2346_v56 = vld [vmem:[%s3271_s8 + $0x8] sm:$0xff] }
  0x8d   : > { %1052 = vperm.xlu0 %2412, %v1009_v58   ;;  %1291 = vmatpush.bf16.msrb.mxu3 %v2346_v56  ;;  %v2348_v57 = vld [vmem:[%s3272_s9 + $0x8] sm:$0xff] }
  0x8e   : > { %v601_v60 = vpop.permute.xlu1 %600  ;;  %v2754_v61 = vpop.permute.xlu2 %1019  ;;  %1473 = vmatpush.bf16.msrb.mxu2 %v2348_v57 }
  0x8f   : > { %v595_v62 = vpop.permute.xlu0 %594  ;;  %vm617_vm4 = vcmp.eq.s32.totalorder %v2743_v52, %v601_v60 }
  0x90   : > { %vm615_vm2 = vcmp.eq.s32.totalorder %v2743_v52, %v595_v62  ;;  %v2177_v13 = vsel %vm617_vm4, 1.0, %v2527_v54 }
  0x91   : > { %v2175_v63 = vsel %vm615_vm2, 1.0, %v2527_v54 }
  0x92   : > { %2191 = vmatmul.msk.f32.vlgmr.msra.gmra.mxu1 %vm652_vm1, %v2175_v63 }
  0x93   : > { %1173 = vmatpush.msra.mxu1 %v1110_v59 }
  0x94   : > { %828 = vperm.xlu1 %2413, %v781_v1   ;;  %1058 = vperm.xlu2 %2414, %v1011_v2  }
  0x95   : > { %591 = vperm.xlu0 %2412, %v550_v3   ;;  %1174 = vmatpush.msra.mxu1 %v1109_v4 }
  0x96   : > { %v784_v5 = vpop.permute.xlu1 %783  ;;  %v2772_v7 = vpop.permute.xlu2 %1022 }
  0x97   : > { %v598_v6 = vpop.permute.xlu0 %597  ;;  %1175 = vmatpush.msra.mxu1 %v1108_v8  ;;  %vm830_vm5 = vcmp.eq.s32.totalorder %v2743_v52, %v784_v5 }
  0x98   : > { %vm616_vm3 = vcmp.eq.s32.totalorder %v2743_v52, %v598_v6  ;;  %v2194_v19 = vsel %vm830_vm5, 1.0, %v2527_v54 }
  0x99   : > { %v2176_v9 = vsel %vm616_vm3, 1.0, %v2527_v54 }
  0x9a   : > { %2192 = vmatmul.msk.f32.gmra.mxu1 %vm652_vm1, %v2176_v9 }
  0x9c   : > { %1556 = vperm.xlu1 %2413, %v2779_v10  }
  0x9d   : > { %1551 = vperm.xlu0 %2412, %v2783_v11  }
  0x9e   : > { %v2788_v12 = vpop.permute.xlu1 %1013  ;;  %v799_v15 = vpop.permute.xlu2 %798 }
  0x9f   : > { %v793_v14 = vpop.permute.xlu0 %792  ;;  %vm835_vm11 = vcmp.eq.s32.totalorder %v2743_v52, %v799_v15 }
  0xa0   : > { %v2199_v29 = vsel %vm835_vm11, 1.0, %v2527_v54  ;;  %vm833_vm2 = vcmp.eq.s32.totalorder %v2743_v52, %v793_v14 }
  0xa1   : > { %v2197_v38 = vsel %vm833_vm2, 1.0, %v2527_v54 }
  0xa2   : > { %2193 = vmatmul.msk.f32.gmra.mxu1 %vm652_vm1, %v2177_v13 }
  0xa6   : > { %v559_v16 = vpop.permute.xlu1 %558  ;;  %v802_v20 = vpop.permute.xlu2 %801 }
  0xa7   : > { %v2793_v17 = vpop.permute.xlu0 %1016  ;;  %vm603_vm6 = vcmp.eq.s32.totalorder %v2743_v52, %v559_v16  ;;  %vm836_vm0 = vcmp.eq.s32.totalorder %v2743_v52, %v802_v20 }
  0xa8   : > { %v2163_v18 = vsel %vm603_vm6, 1.0, %v2527_v54  ;;  %v2200_v35 = vsel %vm836_vm0, 1.0, %v2527_v54  ;;  %vm1060_vm6 = vcmp.eq.s32.totalorder %v2743_v52, %v2788_v12  ;;  %vm1061_vm11 = vcmp.eq.s32.totalorder %v2743_v52, %v2793_v17 }
  0xa9   : > { %2179 = vmatmul.msk.f32.gmra.mxu0 %vm652_vm1, %v2163_v18  ;;  %v2226_v44 = vsel %vm1060_vm6, 1.0, %v2527_v54  ;;  %v2227_v53 = vsel %vm1061_vm11, 1.0, %v2527_v54  ;;  %vm1062_vm0 = vcmp.eq.s32.totalorder %v2743_v52, %v2754_v61 }
  0xaa   : > { %2210 = vmatmul.msk.f32.vlgmr.msrb.gmra.mxu1 %vm882_vm7, %v2194_v19  ;;  %v2228_v1 = vsel %vm1062_vm0, 1.0, %v2527_v54 }
  0xae   : > { %v796_v21 = vpop.permute.xlu1 %795  ;;  %v805_v26 = vpop.permute.xlu2 %804 }
  0xaf   : > { %v562_v23 = vpop.permute.xlu0 %561  ;;  %vm834_vm9 = vcmp.eq.s32.totalorder %v2743_v52, %v796_v21  ;;  %vm837_vm5 = vcmp.eq.s32.totalorder %v2743_v52, %v805_v26 }
  0xb0   : > { %vm604_vm10 = vcmp.eq.s32.totalorder %v2743_v52, %v562_v23  ;;  %v2198_v24 = vsel %vm834_vm9, 1.0, %v2527_v54  ;;  %v2201_v42 = vsel %vm837_vm5, 1.0, %v2527_v54  ;;  %vm1063_vm5 = vcmp.eq.s32.totalorder %v2743_v52, %v2772_v7 }
  0xb1   : > { %v2164_v25 = vsel %vm604_vm10, 1.0, %v2527_v54  ;;  %2214 = vmatmul.msk.f32.vlgmr.msra.gmra.mxu3 %vm882_vm7, %v2198_v24  ;;  %v2229_v8 = vsel %vm1063_vm5, 1.0, %v2527_v54 }
  0xb2   : > { %2180 = vmatmul.msk.f32.gmra.mxu0 %vm652_vm1, %v2164_v25  ;;  %2211 = vmatmul.msk.f32.gmra.mxu1 %vm882_vm7, %v2195_v22 }
  0xb6   : > { %v565_v27 = vpop.permute.xlu1 %564  ;;  %v808_v36 = vpop.permute.xlu2 %807 }
  0xb7   : > { %v1026_v28 = vpop.permute.xlu0 %1025  ;;  %vm605_vm13 = vcmp.eq.s32.totalorder %v2743_v52, %v565_v27  ;;  %vm838_vm10 = vcmp.eq.s32.totalorder %v2743_v52, %v808_v36 }
  0xb8   : > { %vm1064_vm14 = vcmp.eq.s32.totalorder %v2743_v52, %v1026_v28  ;;  %v2165_v30 = vsel %vm605_vm13, 1.0, %v2527_v54  ;;  %v2202_v50 = vsel %vm838_vm10, 1.0, %v2527_v54 }
  0xb9   : > { %v2230_v32 = vsel %vm1064_vm14, 1.0, %v2527_v54  ;;  %2215 = vmatmul.msk.f32.gmra.mxu3 %vm882_vm7, %v2199_v29 }
  0xba   : > { %2181 = vmatmul.msk.f32.gmra.mxu0 %vm652_vm1, %v2165_v30  ;;  %2212 = vmatmul.msk.f32.gmra.mxu1 %vm882_vm7, %v2196_v31  ;;  %v2345_v31 = vld [vmem:[%s3271_s8] sm:$0xff] }
  0xbb   : > { %2246 = vmatmul.msk.f32.vlgmr.msra.gmra.mxu2 %vm1111_vm15, %v2230_v32  ;;  %v2343_v32 = vld [vmem:[%s3270_s7] sm:$0xff]  ;;  %1292 = vmatpush.bf16.msrb.mxu3 %v2345_v31 }
  0xbc   : > { %1377 = vmatpush.bf16.msrb.mxu0 %v2343_v32 }
  0xbe   : > { %v568_v33 = vpop.permute.xlu1 %567  ;;  %v811_v46 = vpop.permute.xlu2 %810 }
  0xbf   : > { %v1029_v34 = vpop.permute.xlu0 %1028  ;;  %vm606_vm3 = vcmp.eq.s32.totalorder %v2743_v52, %v568_v33  ;;  %vm839_vm14 = vcmp.eq.s32.totalorder %v2743_v52, %v811_v46  ;;  %v2347_v33 = vld [vmem:[%s3272_s9] sm:$0xff] }
  0xc0   : > { %vm1065_vm4 = vcmp.eq.s32.totalorder %v2743_v52, %v1029_v34  ;;  %v2166_v37 = vsel %vm606_vm3, 1.0, %v2527_v54  ;;  %v2203_v62 = vsel %vm839_vm14, 1.0, %v2527_v54  ;;  %1474 = vmatpush.bf16.msrb.mxu2 %v2347_v33 }
  0xc1   : > { %v2231_v39 = vsel %vm1065_vm4, 1.0, %v2527_v54  ;;  %2216 = vmatmul.msk.f32.gmra.mxu3 %vm882_vm7, %v2200_v35 }
  0xc2   : > { %2182 = vmatmul.msk.f32.gmra.mxu0 %vm652_vm1, %v2166_v37  ;;  %2213 = vmatmul.msk.f32.gmra.mxu1 %vm882_vm7, %v2197_v38 }
  0xc3   : > { %2247 = vmatmul.msk.f32.gmra.mxu2 %vm1111_vm15, %v2231_v39 }
  0xc6   : > { %v571_v40 = vpop.permute.xlu1 %570  ;;  %v814_v58 = vpop.permute.xlu2 %813 }
  0xc7   : > { %v1032_v41 = vpop.permute.xlu0 %1031  ;;  %vm607_vm8 = vcmp.eq.s32.totalorder %v2743_v52, %v571_v40  ;;  %vm840_vm4 = vcmp.eq.s32.totalorder %v2743_v52, %v814_v58 }
  0xc8   : > { %vm1066_vm9 = vcmp.eq.s32.totalorder %v2743_v52, %v1032_v41  ;;  %v2167_v43 = vsel %vm607_vm8, 1.0, %v2527_v54  ;;  %v2204_v5 = vsel %vm840_vm4, 1.0, %v2527_v54 }
  0xc9   : > { %v2232_v45 = vsel %vm1066_vm9, 1.0, %v2527_v54  ;;  %2217 = vmatmul.msk.f32.gmra.mxu3 %vm882_vm7, %v2201_v42 }
  0xca   : > { %2183 = vmatmul.msk.f32.gmra.mxu0 %vm652_vm1, %v2167_v43  ;;  %2242 = vmatmul.msk.f32.vlgmr.msra.gmra.mxu1 %vm1111_vm15, %v2226_v44 }
  0xcb   : > { %2248 = vmatmul.msk.f32.gmra.mxu2 %vm1111_vm15, %v2232_v45 }
  0xce   : > { %v574_v48 = vpop.permute.xlu1 %573  ;;  %v817_v61 = vpop.permute.xlu2 %816 }
  0xcf   : > { %v1035_v49 = vpop.permute.xlu0 %1034  ;;  %vm608_vm12 = vcmp.eq.s32.totalorder %v2743_v52, %v574_v48  ;;  %vm841_vm9 = vcmp.eq.s32.totalorder %v2743_v52, %v817_v61  ;;  %v1536_v61 = vld [vmem:[%s2769_s20 + $0x20] sm:$0xff] }
  0xd0   : > { %vm1067_vm13 = vcmp.eq.s32.totalorder %v2743_v52, %v1035_v49  ;;  %v2168_v51 = vsel %vm608_vm12, 1.0, %v2527_v54  ;;  %v2205_v13 = vsel %vm841_vm9, 1.0, %v2527_v54 }
  0xd1   : > { %v2233_v55 = vsel %vm1067_vm13, 1.0, %v2527_v54  ;;  %2218 = vmatmul.msk.f32.gmra.mxu3 %vm882_vm7, %v2202_v50  ;;  %v2528_v50 = vmov 2  }
  0xd2   : > { %2184 = vmatmul.msk.f32.gmra.mxu0 %vm652_vm1, %v2168_v51  ;;  %2243 = vmatmul.msk.f32.gmra.mxu1 %vm1111_vm15, %v2227_v53  ;;  %v1534_v53 = vld [vmem:[%s2769_s20 + $0x10] sm:$0xff] }
  0xd3   : > { %2249 = vmatmul.msk.f32.gmra.mxu2 %vm1111_vm15, %v2233_v55  ;;  %2417 = vset.pattern.permute.xlu1 %v2528_v50 }
  0xd4   : > { %1762 = vperm.xlu1 %2417, %v2783_v11  }
  0xd6   : > { %v577_v59 = vpop.permute.xlu1 %576  ;;  %v820_v14 = vpop.permute.xlu2 %819 }
  0xd7   : > { %v1038_v60 = vpop.permute.xlu0 %1037  ;;  %vm609_vm2 = vcmp.eq.s32.totalorder %v2743_v52, %v577_v59  ;;  %vm842_vm12 = vcmp.eq.s32.totalorder %v2743_v52, %v820_v14  ;;  %v1535_v59 = vld [vmem:[%s2769_s20 + $0x18] sm:$0xff] }
  0xd8   : > { %vm1068_vm3 = vcmp.eq.s32.totalorder %v2743_v52, %v1038_v60  ;;  %v2169_v63 = vsel %vm609_vm2, 1.0, %v2527_v54  ;;  %v2206_v19 = vsel %vm842_vm12, 1.0, %v2527_v54  ;;  %v2529_v60 = vmov 1  }
  0xd9   : > { %v2234_v2 = vsel %vm1068_vm3, 1.0, %v2527_v54  ;;  %2219 = vmatmul.msk.f32.gmra.mxu3 %vm882_vm7, %v2203_v62  ;;  %2415 = vset.pattern.permute.xlu2 %v2529_v60 }
  0xda   : > { %2185 = vmatmul.msk.f32.gmra.mxu0 %vm652_vm1, %v2169_v63  ;;  %2244 = vmatmul.msk.f32.gmra.mxu1 %vm1111_vm15, %v2228_v1 }
  0xdb   : > { %2250 = vmatmul.msk.f32.gmra.mxu2 %vm1111_vm15, %v2234_v2  ;;  %1664 = vperm.xlu2 %2415, %v2783_v11  }
  0xdc   : > { %2419 = vset.pattern.permute.xlu1 %v2526_v0  ;;  %2416 = vset.pattern.permute.xlu0 %v2529_v60 }
  0xdd   : > { %1561 = vperm.xlu1 %2419, %v1534_v53   ;;  %1668 = vperm.xlu0 %2416, %v2779_v10  }
  0xde   : > { %v580_v3 = vpop.permute.xlu1 %579  ;;  %v823_v22 = vpop.permute.xlu2 %822 }
  0xdf   : > { %v1041_v4 = vpop.permute.xlu0 %1040  ;;  %vm610_vm6 = vcmp.eq.s32.totalorder %v2743_v52, %v580_v3  ;;  %vm843_vm0 = vcmp.eq.s32.totalorder %v2743_v52, %v823_v22 }
  0xe0   : > { %vm1069_vm8 = vcmp.eq.s32.totalorder %v2743_v52, %v1041_v4  ;;  %v2170_v6 = vsel %vm610_vm6, 1.0, %v2527_v54  ;;  %v2207_v25 = vsel %vm843_vm0, 1.0, %v2527_v54 }
  0xe1   : > { %v2235_v9 = vsel %vm1069_vm8, 1.0, %v2527_v54  ;;  %2220 = vmatmul.msk.f32.gmra.mxu3 %vm882_vm7, %v2204_v5 }
  0xe2   : > { %2186 = vmatmul.msk.f32.gmra.mxu0 %vm652_vm1, %v2170_v6  ;;  %2245 = vmatmul.msk.f32.gmra.mxu1 %vm1111_vm15, %v2229_v8 }
  0xe3   : > { %2251 = vmatmul.msk.f32.gmra.mxu2 %vm1111_vm15, %v2235_v9  ;;  %2418 = vset.pattern.permute.xlu2 %v2528_v50 }
  0xe4   : > { %1766 = vperm.xlu2 %2418, %v2779_v10  }
  0xe5   : > { %2421 = vset.pattern.permute.xlu1 %v2529_v60  ;;  %1672 = vperm.xlu0 %2416, %v1534_v53  }
  0xe6   : > { %v583_v7 = vpop.permute.xlu1 %582  ;;  %v1056_v35 = vpop.permute.xlu2 %1055  ;;  %1676 = vperm.xlu1 %2421, %v1535_v59  }
  0xe7   : > { %v1044_v12 = vpop.permute.xlu0 %1043  ;;  %vm611_vm10 = vcmp.eq.s32.totalorder %v2743_v52, %v583_v7  ;;  %vm1074_vm6 = vcmp.eq.s32.totalorder %v2743_v52, %v1056_v35 }
  0xe8   : > { %vm1070_vm11 = vcmp.eq.s32.totalorder %v2743_v52, %v1044_v12  ;;  %v2171_v15 = vsel %vm611_vm10, 1.0, %v2527_v54  ;;  %v2240_v40 = vsel %vm1074_vm6, 1.0, %v2527_v54 }
  0xe9   : > { %v2236_v16 = vsel %vm1070_vm11, 1.0, %v2527_v54  ;;  %2221 = vmatmul.msk.f32.gmra.mxu3 %vm882_vm7, %v2205_v13  ;;  %v1537_v13 = vld [vmem:[%s2769_s20 + $0x28] sm:$0xff] }
  0xea   : > { %2187 = vmatmul.msk.f32.gmra.mxu0 %vm652_vm1, %v2171_v15 }
  0xeb   : > { %2252 = vmatmul.msk.f32.gmra.mxu2 %vm1111_vm15, %v2236_v16 }
  0xec   : > { %2420 = vset.pattern.permute.xlu2 %v2526_v0 }
  0xed   : > { %1566 = vperm.xlu2 %2420, %v1535_v59   ;;  %2423 = vset.pattern.permute.xlu0 %v2528_v50 }
  0xee   : > { %v586_v17 = vpop.permute.xlu1 %585  ;;  %v1059_v41 = vpop.permute.xlu2 %1058  ;;  %2424 = vset.pattern.permute.xlu1 %v2526_v0  ;;  %1774 = vperm.xlu0 %2423, %v1535_v59  }
  0xef   : > { %v1047_v18 = vpop.permute.xlu0 %1046  ;;  %vm612_vm13 = vcmp.eq.s32.totalorder %v2743_v52, %v586_v17  ;;  %vm1075_vm10 = vcmp.eq.s32.totalorder %v2743_v52, %v1059_v41  ;;  %1571 = vperm.xlu1 %2424, %v1536_v61  }
  0xf0   : > { %vm1071_vm14 = vcmp.eq.s32.totalorder %v2743_v52, %v1047_v18  ;;  %v2172_v20 = vsel %vm612_vm13, 1.0, %v2527_v54  ;;  %v2241_v43 = vsel %vm1075_vm10, 1.0, %v2527_v54 }
  0xf1   : > { %v2237_v21 = vsel %vm1071_vm14, 1.0, %v2527_v54  ;;  %2222 = vmatmul.msk.f32.gmra.mxu3 %vm882_vm7, %v2206_v19  ;;  %v1538_v19 = vld [vmem:[%s2769_s20 + $0x30] sm:$0xff] }
  0xf2   : > { %2188 = vmatmul.msk.f32.gmra.mxu0 %vm652_vm1, %v2172_v20 }
  0xf3   : > { %2253 = vmatmul.msk.f32.gmra.mxu2 %vm1111_vm15, %v2237_v21 }
  0xf5   : > { %2422 = vset.pattern.permute.xlu2 %v2528_v50 }
  0xf6   : > { %v589_v23 = vpop.permute.xlu1 %588  ;;  %1770 = vperm.xlu2 %2422, %v1534_v53   ;;  %1778 = vperm.xlu0 %2423, %v1536_v61  }
  0xf7   : > { %v1050_v24 = vpop.permute.xlu0 %1049  ;;  %vm613_vm2 = vcmp.eq.s32.totalorder %v2743_v52, %v589_v23  ;;  %2426 = vset.pattern.permute.xlu1 %v2529_v60 }
  0xf8   : > { %vm1072_vm3 = vcmp.eq.s32.totalorder %v2743_v52, %v1050_v24  ;;  %v2173_v26 = vsel %vm613_vm2, 1.0, %v2527_v54  ;;  %1680 = vperm.xlu1 %2426, %v1536_v61   ;;  %v2356_v61 = vld [vmem:[%s3275_s12 + $0x38] sm:$0xff] }
  0xf9   : > { %v2238_v27 = vsel %vm1072_vm3, 1.0, %v2527_v54  ;;  %2223 = vmatmul.msk.f32.gmra.mxu3 %vm882_vm7, %v2207_v25  ;;  %1970 = vmatpush.bf16.msrb.mxu1 %v2356_v61 }
  0xfa   : > { %2189 = vmatmul.msk.f32.gmra.mxu0 %vm652_vm1, %v2173_v26 }
  0xfb   : > { %2254 = vmatmul.msk.f32.gmra.mxu2 %vm1111_vm15, %v2238_v27 }
  0xfe   : > { %v826_v28 = vpop.permute.xlu1 %825  ;;  %2425 = vset.pattern.permute.xlu2 %v2526_v0  ;;  %2430 = vset.pattern.permute.xlu0 %v2526_v0 }
  0xff   : > { %v1053_v29 = vpop.permute.xlu0 %1052  ;;  %vm844_vm4 = vcmp.eq.s32.totalorder %v2743_v52, %v826_v28  ;;  %1576 = vperm.xlu2 %2425, %v1537_v13  }
 0x100   : > { %vm1073_vm5 = vcmp.eq.s32.totalorder %v2743_v52, %v1053_v29  ;;  %v2208_v30 = vsel %vm844_vm4, 1.0, %v2527_v54  ;;  %2428 = vset.pattern.permute.xlu1 %v2528_v50 }
 0x101   : > { %v2239_v34 = vsel %vm1073_vm5, 1.0, %v2527_v54  ;;  %2224 = vmatmul.msk.f32.gmra.mxu3 %vm882_vm7, %v2208_v30  ;;  %1782 = vperm.xlu1 %2428, %v1537_v13   ;;  %v1541_v30 = vld [vmem:[%s2769_s20 + $0x48] sm:$0xff] }
 0x103   : > { %2255 = vmatmul.msk.f32.gmra.mxu2 %vm1111_vm15, %v2239_v34  ;;  %v1539_v34 = vld [vmem:[%s2769_s20 + $0x38] sm:$0xff] }
 0x104   : > { %1586 = vperm.xlu0 %2430, %v1539_v34  }
 0x106   : > { %v829_v36 = vpop.permute.xlu1 %828  ;;  %v718_v45 = vpop.f32.mrf.mxu0 }
 0x107   : > { %v592_v37 = vpop.permute.xlu0 %591  ;;  %vm845_vm8 = vcmp.eq.s32.totalorder %v2743_v52, %v829_v36  ;;  %2427 = vset.pattern.permute.xlu2 %v2529_v60 }
 0x108   : > { %vm614_vm9 = vcmp.eq.s32.totalorder %v2743_v52, %v592_v37  ;;  %v2209_v38 = vsel %vm845_vm8, 1.0, %v2527_v54  ;;  %1684 = vperm.xlu2 %2427, %v1537_v13  }
 0x109   : > { %v2174_v39 = vsel %vm614_vm9, 1.0, %v2527_v54  ;;  %2225 = vmatmul.msk.f32.gmra.mxu3 %vm882_vm7, %v2209_v38  ;;  %2431 = vset.pattern.permute.xlu1 %v2529_v60  ;;  %v1540_v38 = vld [vmem:[%s2769_s20 + $0x40] sm:$0xff] }
 0x10a   : > { %2190 = vmatmul.msk.f32.gmra.mxu0 %vm652_vm1, %v2174_v39  ;;  %1688 = vperm.xlu1 %2431, %v1538_v19  }
 0x10b   : > { %2256 = vmatmul.msk.f32.gmra.mxu2 %vm1111_vm15, %v2240_v40 }
 0x10c   : > { %1591 = vperm.xlu0 %2430, %v1540_v38  }
 0x10f   : > { %v2948_v42 = vpop.f32.mrf.mxu1 }
 0x110   : > { %2429 = vset.pattern.permute.xlu2 %v2526_v0 }
 0x111   : > { %1581 = vperm.xlu2 %2429, %v1538_v19  }
 0x112   : > { %2433 = vset.pattern.permute.xlu1 %v2528_v50 }
 0x113   : > { %2257 = vmatmul.msk.f32.gmra.mxu2 %vm1111_vm15, %v2241_v43  ;;  %1786 = vperm.xlu1 %2433, %v1538_v19  }
 0x114   : > { %2437 = vset.pattern.permute.xlu0 %v2529_v60 }
 0x115   : > { %1700 = vperm.xlu0 %2437, %v1541_v30  }
 0x117   : > { %v2952_v44 = vpop.f32.mrf.mxu1 }
 0x119   : > { %2432 = vset.pattern.permute.xlu2 %v2529_v60 }
 0x11a   : > { %1692 = vperm.xlu2 %2432, %v1539_v34  }
 0x11b   : > { %2435 = vset.pattern.permute.xlu1 %v2526_v0 }
 0x11c   : > { %1596 = vperm.xlu1 %2435, %v1541_v30  }
 0x11f   : > { %v2954_v46 = vpop.f32.mrf.mxu1 }
 0x122   : > { %2434 = vset.pattern.permute.xlu2 %v2528_v50 }
 0x123   : > { %1790 = vperm.xlu2 %2434, %v1539_v34  }
 0x124   : > { %2438 = vset.pattern.permute.xlu1 %v2528_v50 }
 0x125   : > { %1794 = vperm.xlu1 %2438, %v1540_v38  }
 0x126   : > { %v721_v47 = vpop.f32.mrf.mxu0 }
 0x127   : > { %v1225_v48 = vpack.c.bf16 %v721_v47, %v718_v45  ;;  %v948_v49 = vpop.f32.mrf.mxu1  ;;  %v1542_v45 = vld [vmem:[%s2769_s20 + $0x50] sm:$0xff] }
 0x128   : > { %1704 = vperm.xlu0 %2437, %v1542_v45  }
 0x129   : > { %2282 = vmatmul.msk.bf16.vlgmr.msrb.gmra.mxu0 %vm882_vm7, %v1225_v48 }
 0x12b   : > { %2436 = vset.pattern.permute.xlu2 %v2529_v60 }
 0x12c   : > { %1696 = vperm.xlu2 %2436, %v1540_v38  }
 0x12d   : > { %2440 = vset.pattern.permute.xlu1 %v2526_v0 }
 0x12e   : > { %1601 = vperm.xlu1 %2440, %v1542_v45  }
 0x12f   : > { %v724_v52 = vpop.f32.mrf.mxu0  ;;  %v951_v54 = vpop.f32.mrf.mxu1 }
 0x130   : > { %v1237_v51 = vpack.c.bf16 %v951_v54, %v948_v49  ;;  %v1543_v54 = vld [vmem:[%s2769_s20 + $0x58] sm:$0xff]  ;;  %2444 = vset.pattern.permute.xlu0 %v2528_v50 }
 0x131   : > { %1806 = vperm.xlu0 %2444, %v1543_v54  }
 0x132   : > { %2266 = vmatmul.msk.bf16.vlgmr.msrb.gmra.mxu3 %vm882_vm7, %v1237_v51 }
 0x134   : > { %v960_v55 = vpop.f32.mrf.mxu3  ;;  %2439 = vset.pattern.permute.xlu2 %v2528_v50 }
 0x135   : > { %1798 = vperm.xlu2 %2439, %v1541_v30  }
 0x136   : > { %2442 = vset.pattern.permute.xlu1 %v2529_v60 }
 0x137   : > { %v727_v56 = vpop.f32.mrf.mxu0  ;;  %v954_v57 = vpop.f32.mrf.mxu1  ;;  %1708 = vperm.xlu1 %2442, %v1543_v54  }
 0x138   : > { %v1226_v58 = vpack.c.bf16 %v727_v56, %v724_v52  ;;  %v1544_v56 = vld [vmem:[%s2769_s20 + $0x60] sm:$0xff] }
 0x139   : > { %1810 = vperm.xlu0 %2444, %v1544_v56  }
 0x13a   : > { %2283 = vmatmul.msk.bf16.gmra.mxu0 %vm882_vm7, %v1226_v58  ;;  %v1232_v58 = vpack.c.bf16 %v2954_v46, %v2952_v44  ;;  %v3029_v44 = vpop.permute.xlu2 %1664  ;;  %v1545_v46 = vld [vmem:[%s2769_s20 + $0x68] sm:$0xff] }
 0x13c   : > { %v963_v62 = vpop.f32.mrf.mxu3 }
 0x13d   : > { %v1239_v7 = vpack.c.bf16 %v963_v62, %v960_v55  ;;  %2441 = vset.pattern.permute.xlu2 %v2526_v0 }
 0x13e   : > { %v1189_v8 = vpop.f32.mrf.mxu2  ;;  %1606 = vperm.xlu2 %2441, %v1543_v54  }
 0x13f   : > { %v730_v63 = vpop.f32.mrf.mxu0  ;;  %v957_v1 = vpop.f32.mrf.mxu1  ;;  %2445 = vset.pattern.permute.xlu1 %v2526_v0 }
 0x140   : > { %v1238_v2 = vpack.c.bf16 %v957_v1, %v954_v57  ;;  %1611 = vperm.xlu1 %2445, %v1544_v56  }
 0x141   : > { %2451 = vset.pattern.permute.xlu0 %v2526_v0 }
 0x142   : > { %2267 = vmatmul.msk.bf16.gmra.mxu3 %vm882_vm7, %v1238_v2 }
 0x144   : > { %v966_v3 = vpop.f32.mrf.mxu3 }
 0x146   : > { %v1192_v18 = vpop.f32.mrf.mxu2  ;;  %2443 = vset.pattern.permute.xlu2 %v2528_v50 }
 0x147   : > { %v1177_v11 = vpop.f32.mrf.mxu1  ;;  %v733_v4 = vpop.f32.mrf.mxu0  ;;  %v1421_v32 = vpack.c.bf16 %v1192_v18, %v1189_v8  ;;  %1802 = vperm.xlu2 %2443, %v1542_v45   ;;  %v2352_v18 = vld [vmem:[%s3275_s12 + $0x18] sm:$0xff] }
 0x148   : > { %v1227_v5 = vpack.c.bf16 %v733_v4, %v730_v63  ;;  %2447 = vset.pattern.permute.xlu1 %v2529_v60  ;;  %v3025_v63 = vpop.permute.xlu1 %1556  ;;  %v3040_v4 = vpop.permute.xlu2 %1766 }
 0x149   : > { %1712 = vperm.xlu1 %2447, %v1544_v56  }
 0x14a   : > { %2284 = vmatmul.msk.bf16.gmra.mxu0 %vm882_vm7, %v1227_v5  ;;  %v1546_v5 = vld [vmem:[%s2769_s20 + $0x70] sm:$0xff] }
 0x14c   : > { %v969_v6 = vpop.f32.mrf.mxu3 }
 0x14d   : > { %v1240_v22 = vpack.c.bf16 %v969_v6, %v966_v3  ;;  %v2355_v6 = vld [vmem:[%s3275_s12 + $0x30] sm:$0xff] }
 0x14e   : > { %v1195_v25 = vpop.f32.mrf.mxu2  ;;  %1971 = vmatpush.bf16.msrb.mxu1 %v2355_v6 }
 0x14f   : > { %v1180_v9 = vpop.f32.mrf.mxu1  ;;  %v736_v10 = vpop.f32.mrf.mxu0  ;;  %2446 = vset.pattern.permute.xlu2 %v2526_v0 }
 0x150   : > { %v1419_v12 = vpack.c.bf16 %v1180_v9, %v1177_v11  ;;  %v3037_v3 = vpop.permute.xlu1 %1762  ;;  %v2354_v9 = vld [vmem:[%s3275_s12 + $0x28] sm:$0xff]  ;;  %1616 = vperm.xlu2 %2446, %v1545_v46  }
 0x151   : > { %2449 = vset.pattern.permute.xlu1 %v2528_v50 }
 0x152   : > { %2268 = vmatmul.msk.bf16.gmra.mxu3 %vm882_vm7, %v1239_v7  ;;  %2298 = vmatmul.msk.bf16.vlgmr.msrb.gmra.mxu2 %vm882_vm7, %v1419_v12 }
 0x153   : > { %1814 = vperm.xlu1 %2449, %v1545_v46   ;;  %1972 = vmatpush.bf16.msrb.mxu1 %v2354_v9 }
 0x154   : > { %v972_v14 = vpop.f32.mrf.mxu3 }
 0x156   : > { %v1198_v29 = vpop.f32.mrf.mxu2 }
 0x157   : > { %v739_v15 = vpop.f32.mrf.mxu0  ;;  %v1183_v16 = vpop.f32.mrf.mxu1  ;;  %v1422_v41 = vpack.c.bf16 %v1198_v29, %v1195_v25  ;;  %v2350_v25 = vld [vmem:[%s3275_s12 + $0x8] sm:$0xff] }
 0x158   : > { %v1228_v17 = vpack.c.bf16 %v739_v15, %v736_v10  ;;  %v3052_v10 = vpop.permute.xlu1 %1561  ;;  %v2353_v15 = vld [vmem:[%s3275_s12 + $0x20] sm:$0xff]  ;;  %2448 = vset.pattern.permute.xlu2 %v2529_v60 }
 0x159   : > { %1973 = vmatpush.bf16.msrb.mxu1 %v2353_v15  ;;  %1716 = vperm.xlu2 %2448, %v1545_v46  }
 0x15a   : > { %2285 = vmatmul.msk.bf16.gmra.mxu0 %vm882_vm7, %v1228_v17 }
 0x15b   : > { %2452 = vset.pattern.permute.xlu1 %v2529_v60 }
 0x15c   : > { %v975_v24 = vpop.f32.mrf.mxu3  ;;  %1720 = vperm.xlu1 %2452, %v1546_v5  }
 0x15d   : > { %v1241_v33 = vpack.c.bf16 %v975_v24, %v972_v14  ;;  %v3054_v14 = vpop.permute.xlu2 %1566  ;;  %1974 = vmatpush.bf16.msrb.mxu1 %v2352_v18 }
 0x15e   : > { %v1201_v36 = vpop.f32.mrf.mxu2 }
 0x15f   : > { %v742_v20 = vpop.f32.mrf.mxu0  ;;  %v1186_v21 = vpop.f32.mrf.mxu1 }
 0x160   : > { %v1420_v23 = vpack.c.bf16 %v1186_v21, %v1183_v16  ;;  %v1547_v16 = vld [vmem:[%s2769_s20 + $0x78] sm:$0xff]  ;;  %v3062_v17 = vpop.permute.xlu1 %1676  ;;  %s2047_s20 = scalar_lea.hbm %s3277_s14, %s2357_s0  ;;  %s2482_s0 = scalar_lea.hbm %s3277_s14, 256 }
 0x161   : > { %1626 = vperm.xlu0 %2451, %v1547_v16   ;;  %2450 = vset.pattern.permute.xlu2 %v2526_v0  ;;  %s2050_s18 = sshll.u32 %s2047_s20, 4  ;;  %s2051_s18 = int_to_ptr.hbm [resolvable:$true] %s2050_s18 }
 0x162   : > { %2269 = vmatmul.msk.bf16.gmra.mxu3 %vm882_vm7, %v1240_v22  ;;  %2299 = vmatmul.msk.bf16.gmra.mxu2 %vm882_vm7, %v1420_v23  ;;  %v2351_v23 = vld [vmem:[%s3275_s12 + $0x10] sm:$0xff]  ;;  %s2476_s28 = sshra.s32 %s2051_s18, 4  ;;  %s2477_s28 = int_to_ptr.hbm [resolvable:$true] %s2476_s28 }
 0x163   : > { %1975 = vmatpush.bf16.msrb.mxu1 %v2351_v23  ;;  %1621 = vperm.xlu2 %2450, %v1546_v5   ;;  %s2478_s17 = scalar_lea.hbm %s2477_s28, 128  ;;  %p2483_p0 = scmp.lt.s32.totalorder %s2477_s28, %s3277_s14 }
 0x164   : > { %v978_v28 = vpop.f32.mrf.mxu3  ;;  %2454 = vset.pattern.permute.xlu1 %v2528_v50  ;;  %p2479_p11 = scmp.ne.s32.totalorder %s2477_s28, %s2478_s17  ;;  %p2484_p1 = scmp.lt.s32.totalorder %s2482_s0, %s2478_s17 }
 0x165   : > { %1818 = vperm.xlu1 %2454, %v1546_v5   ;;  %v3070_v24 = vpop.permute.xlu2 %1770 }
 0x166   : > { %v1204_v47 = vpop.f32.mrf.mxu2  ;;  %p2480_p12 = pnand %p2479_p11, %p2645_p5  ;;  %p2485_p2 = por %p2484_p1, %p2483_p0 }
 0x167   : > { %v745_v26 = vpop.f32.mrf.mxu0  ;;  %v1423_v53 = vpack.c.bf16 %v1204_v47, %v1201_v36  ;;  %1976 = vmatpush.bf16.msrb.mxu1 %v2350_v25 }
 0x168   : > { %v1229_v27 = vpack.c.bf16 %v745_v26, %v742_v20  ;;  %v3078_v26 = vpop.permute.xlu1 %1571  ;;  %p2481_p13 = pneg %p2480_p12 }
 0x169   : > { %2456 = vset.pattern.permute.xlu0 %v2528_v50 }
 0x16a   : > { %2286 = vmatmul.msk.bf16.gmra.mxu0 %vm882_vm7, %v1229_v27  ;;  %p2486_p3 = pnand %p2485_p2, %p2481_p13 }
 0x16b   : > { %2453 = vset.pattern.permute.xlu2 %v2529_v60  ;;  %v3100_v60 = vld [vmem:[%s3273_s10 + $0x1] ss:$0 sm:$0xff] }
 0x16c   : > { %v981_v35 = vpop.f32.mrf.mxu3  ;;  %1724 = vperm.xlu2 %2453, %v1547_v16  }
 0x16d   : > { %v1242_v43 = vpack.c.bf16 %v981_v35, %v978_v28  ;;  %v2349_v28 = vld [vmem:[%s3275_s12] sm:$0xff]  ;;  %v3083_v30 = vpop.permute.xlu2 %1576 }
 0x16e   : > { %v1207_v51 = vpop.f32.mrf.mxu2  ;;  %1977 = vmatpush.bf16.msrb.mxu1 %v2349_v28  ;;  %v1731_v28 = vmul.f32 %v3100_v60, %v3062_v17 }
 0x16f   : > { %v748_v31 = vpop.f32.mrf.mxu0 }
 0x170   : > { %v3086_v0 = vpop.permute.xlu1 %1680 }
 0x172   : > { %2270 = vmatmul.msk.bf16.gmra.mxu3 %vm882_vm7, %v1241_v33  ;;  %2300 = vmatmul.msk.bf16.gmra.mxu2 %vm882_vm7, %v1421_v32  ;;  %v3091_v32 = vld [vmem:[%s3273_s10] ss:$0 sm:$0xff]  ;;  %v1552_v33 = vpop.permute.xlu0 %1551 }
 0x173   : > { %v1630_v38 = vmul.f32 %v3091_v32, %v1552_v33 }
 0x174   : > { %v984_v40 = vpop.f32.mrf.mxu3  ;;  %2455 = vset.pattern.permute.xlu2 %v2528_v50 }
 0x175   : > { %1822 = vperm.xlu2 %2455, %v1547_v16  }
 0x176   : > { %v1210_v57 = vpop.f32.mrf.mxu2 }
 0x177   : > { %v751_v37 = vpop.f32.mrf.mxu0  ;;  %v1424_v1 = vpack.c.bf16 %v1210_v57, %v1207_v51  ;;  %v1631_v51 = vmul.f32 %v3091_v32, %v3025_v63 }
 0x178   : > { %v1230_v39 = vpack.c.bf16 %v751_v37, %v748_v31  ;;  %v3093_v37 = vpop.permute.xlu2 %1684  ;;  %v3109_v45 = vpop.permute.xlu1 %1782 }
 0x17a   : > { %2287 = vmatmul.msk.bf16.gmra.mxu0 %vm882_vm7, %v1230_v39 }
 0x17c   : > { %v987_v52 = vpop.f32.mrf.mxu3 }
 0x17d   : > { %v1243_v55 = vpack.c.bf16 %v987_v52, %v984_v40 }
 0x17e   : > { %v1213_v62 = vpop.f32.mrf.mxu2 }
 0x180   : > { %v3126_v46 = vpop.permute.xlu1 %1688 }
 0x182   : > { %2271 = vmatmul.msk.bf16.gmra.mxu3 %vm882_vm7, %v1242_v43  ;;  %2301 = vmatmul.msk.bf16.gmra.mxu2 %vm882_vm7, %v1422_v41  ;;  %v1728_v41 = vmul.f32 %v3100_v60, %v3029_v44  ;;  %v3107_v43 = vld [vmem:[%s3273_s10 + $0x2] ss:$0 sm:$0xff] }
 0x186   : > { %v1216_v11 = vpop.f32.mrf.mxu2 }
 0x187   : > { %v754_v48 = vpop.f32.mrf.mxu0  ;;  %v1425_v8 = vpack.c.bf16 %v1216_v11, %v1213_v62  ;;  %v1827_v62 = vmul.f32 %v3107_v43, %v3040_v4  ;;  %v1632_v11 = vmul.f32 %v3091_v32, %v3052_v10  ;;  %v1633_v10 = vmul.f32 %v3091_v32, %v3054_v14 }
 0x188   : > { %v1231_v49 = vpack.c.bf16 %v2948_v42, %v754_v48  ;;  %v990_v42 = vpop.f32.mrf.mxu3  ;;  %v3138_v23 = vpop.permute.xlu1 %1786 }
 0x18a   : > { %2288 = vmatmul.msk.bf16.gmra.mxu0 %vm882_vm7, %v1231_v49  ;;  %v1669_v49 = vpop.permute.xlu0 %1668 }
 0x18e   : > { %v1219_v7 = vpop.f32.mrf.mxu2 }
 0x190   : > { %v993_v59 = vpop.f32.mrf.mxu3 }
 0x191   : > { %v1244_v2 = vpack.c.bf16 %v993_v59, %v990_v42  ;;  %v3116_v42 = vpop.permute.xlu2 %1581 }
 0x192   : > { %2272 = vmatmul.msk.bf16.gmra.mxu3 %vm882_vm7, %v1243_v55  ;;  %2302 = vmatmul.msk.bf16.gmra.mxu2 %vm882_vm7, %v1423_v53  ;;  %v1826_v53 = vmul.f32 %v3107_v43, %v3037_v3  ;;  %v1729_v55 = vmul.f32 %v3100_v60, %v1669_v49  ;;  %v1673_v9 = vpop.permute.xlu0 %1672 }
 0x193   : > { %v1730_v15 = vmul.f32 %v3100_v60, %v1673_v9 }
 0x196   : > { %v1222_v19 = vpop.f32.mrf.mxu2 }
 0x197   : > { %v1426_v22 = vpack.c.bf16 %v1222_v19, %v1219_v7 }
 0x19a   : > { %2289 = vmatmul.msk.bf16.gmra.mxu0 %vm882_vm7, %v1232_v58  ;;  %v3121_v58 = vld [vmem:[%s3274_s11] ss:$0 sm:$0xff] }
 0x1a2   : > { %2273 = vmatmul.msk.bf16.gmra.mxu3 %vm882_vm7, %v1244_v2  ;;  %2303 = vmatmul.msk.bf16.gmra.mxu2 %vm882_vm7, %v1424_v1 }
 0x1a6   : > { %v1379_v12 = vpop.f32.mrf.mxu0 }
 0x1ae   : > { %v1381_v21 = vpop.f32.mrf.mxu0 }
 0x1b2   : > { %2304 = vmatmul.msk.bf16.gmra.mxu2 %vm882_vm7, %v1425_v8 }
 0x1b5   : > { %v1294_v13 = vpop.f32.mrf.mxu3 }
 0x1b6   : > { %v1380_v35 = vadd.f32 %v1379_v12, %v1294_v13  ;;  %v3131_v13 = vpop.permute.xlu2 %1692 }
 0x1b7   : > { %v1384_v29 = vpop.f32.mrf.mxu0 }
 0x1bd   : > { %v1296_v20 = vpop.f32.mrf.mxu3 }
 0x1be   : > { %v1382_v47 = vadd.f32 %v1381_v21, %v1296_v20  ;;  %v1828_v21 = vmul.f32 %v3107_v43, %v3070_v24 }
 0x1bf   : > { %v1386_v34 = vpop.f32.mrf.mxu0 }
 0x1c2   : > { %2305 = vmatmul.msk.bf16.gmra.mxu2 %vm882_vm7, %v1426_v22 }
 0x1c5   : > { %v1299_v27 = vpop.f32.mrf.mxu3 }
 0x1c6   : > { %v1385_v63 = vadd.f32 %v1384_v29, %v1299_v27  ;;  %v1775_v27 = vpop.permute.xlu0 %1774 }
 0x1c7   : > { %v1389_v52 = vpop.f32.mrf.mxu0  ;;  %v1829_v29 = vmul.f32 %v3107_v43, %v1775_v27 }
 0x1cd   : > { %v1301_v31 = vpop.f32.mrf.mxu3 }
 0x1ce   : > { %v1387_v18 = vadd.f32 %v1386_v34, %v1301_v31 }
 0x1cf   : > { %v1391_v8 = vpop.f32.mrf.mxu0 }
 0x1d5   : > { %v1476_v36 = vpop.f32.mrf.mxu2  ;;  %v1304_v50 = vpop.f32.mrf.mxu3 }
 0x1d6   : > { %v1516_v39 = vadd.f32 %v1476_v36, %v1380_v35  ;;  %v1791_v36 = vpop.permute.xlu2 %1790 }
 0x1d7   : > { %v1394_v34 = vpop.f32.mrf.mxu0 }
 0x1d8   : > { %v1646_v40 = vadd.f32 %v1630_v38, %v1516_v39  ;;  %v1390_v38 = vadd.f32 %v1389_v52, %v1304_v50 }
 0x1da   : > { %v1744_v48 = vadd.f32 %v1728_v41, %v1646_v40  ;;  %v1634_v40 = vmul.f32 %v3091_v32, %v3078_v26 }
 0x1dc   : > { %v1842_v57 = vadd.f32 %v1826_v53, %v1744_v48  ;;  %v1732_v53 = vmul.f32 %v3100_v60, %v3086_v0  ;;  %v1831_v0 = vmul.f32 %v3107_v43, %v3109_v45 }
 0x1dd   : > { %v1478_v54 = vpop.f32.mrf.mxu2  ;;  %v1306_v61 = vpop.f32.mrf.mxu3 }
 0x1de   : > { %v1517_v56 = vadd.f32 %v1478_v54, %v1382_v47  ;;  %v1862_v2 = vadd.f32 %v3121_v58, %v1842_v57  ;;  %v3147_v54 = vpop.permute.xlu1 %1596  ;;  %v1697_v26 = vpop.permute.xlu2 %1696 }
 0x1df   : > { %v1396_v52 = vpop.f32.mrf.mxu0 }
 0x1e0   : > { %v1647_v59 = vadd.f32 %v1631_v51, %v1517_v56  ;;  %v1878_v7 = vmax.f32 %v1862_v2, 0.0  ;;  %v1392_v56 = vadd.f32 %v1391_v8, %v1306_v61  ;;  %v1733_v2 = vmul.f32 %v3100_v60, %v3093_v37 }
 0x1e2   : > { %v1745_v1 = vadd.f32 %v1729_v55, %v1647_v59  ;;  %v1779_v55 = vpop.permute.xlu0 %1778 }
 0x1e4   : > { %v1843_v44 = vadd.f32 %v1827_v62, %v1745_v1  ;;  %v1635_v62 = vmul.f32 %v3091_v32, %v3083_v30  ;;  %v1830_v1 = vmul.f32 %v3107_v43, %v1779_v55 }
 0x1e5   : > { %v1481_v3 = vpop.f32.mrf.mxu2  ;;  %v1309_v25 = vpop.f32.mrf.mxu3 }
 0x1e6   : > { %v1863_v5 = vadd.f32 %v3121_v58, %v1843_v44  ;;  %v1518_v6 = vadd.f32 %v1481_v3, %v1385_v63  ;;  %v1795_v61 = vpop.permute.xlu1 %1794 }
 0x1e8   : > { %v1879_v12 = vmax.f32 %v1863_v5, 0.0  ;;  %v1648_v4 = vadd.f32 %v1632_v11, %v1518_v6  ;;  %v1395_v6 = vadd.f32 %v1394_v34, %v1309_v25  ;;  %v1735_v34 = vmul.f32 %v3100_v60, %v3131_v13 }
 0x1ea   : > { %v1894_v16 = vpack.c.bf16 %v1879_v12, %v1878_v7  ;;  %v1746_v19 = vadd.f32 %v1730_v15, %v1648_v4  ;;  %v1399_v7 = vpop.f32.mrf.mxu0  ;;  %v1636_v12 = vmul.f32 %v3091_v32, %v3116_v42  ;;  %v1799_v15 = vpop.permute.xlu2 %1798 }
 0x1eb   : > { %v1587_v45 = vpop.permute.xlu0 %1586 }
 0x1ec   : > { %1978 = vmatmul.bf16.vlgmr.msrb.gmra.mxu1 %v1894_v16  ;;  %v1844_v33 = vadd.f32 %v1828_v21, %v1746_v19 }
 0x1ed   : > { %v1483_v20 = vpop.f32.mrf.mxu2  ;;  %v1311_v51 = vpop.f32.mrf.mxu3 }
 0x1ee   : > { %v1519_v22 = vadd.f32 %v1483_v20, %v1387_v18  ;;  %v1864_v39 = vadd.f32 %v3121_v58, %v1844_v33  ;;  %v1734_v20 = vmul.f32 %v3100_v60, %v3126_v46  ;;  %v1397_v21 = vadd.f32 %v1396_v52, %v1311_v51  ;;  %v1602_v27 = vpop.permute.xlu1 %1601 }
 0x1f0   : > { %v1649_v31 = vadd.f32 %v1633_v10, %v1519_v22  ;;  %v1880_v17 = vmax.f32 %v1864_v39, 0.0  ;;  %v1637_v22 = vmul.f32 %v3091_v32, %v1587_v45 }
 0x1f2   : > { %v1747_v35 = vadd.f32 %v1731_v28, %v1649_v31  ;;  %v1401_v33 = vpop.f32.mrf.mxu0  ;;  %v1607_v46 = vpop.permute.xlu2 %1606 }
 0x1f4   : > { %v1845_v14 = vadd.f32 %v1829_v29, %v1747_v35  ;;  %v1832_v29 = vmul.f32 %v3107_v43, %v3138_v23 }
 0x1f5   : > { %v1486_v24 = vpop.f32.mrf.mxu2  ;;  %v1314_v5 = vpop.f32.mrf.mxu3 }
 0x1f6   : > { %v1520_v41 = vadd.f32 %v1486_v24, %v1390_v38  ;;  %v1865_v47 = vadd.f32 %v3121_v58, %v1845_v14  ;;  %v1833_v14 = vmul.f32 %v3107_v43, %v1791_v36  ;;  %v1592_v24 = vpop.permute.xlu0 %1591  ;;  %v1709_v51 = vpop.permute.xlu1 %1708  ;;  %v1736_v36 = vmul.f32 %v3100_v60, %v1697_v26 }
 0x1f7   : > { %v1835_v26 = vmul.f32 %v3107_v43, %v1799_v15 }
 0x1f8   : > { %v1650_v48 = vadd.f32 %v1634_v40, %v1520_v41  ;;  %v1881_v49 = vmax.f32 %v1865_v47, 0.0  ;;  %v1400_v40 = vadd.f32 %v1399_v7, %v1314_v5 }
 0x1fa   : > { %v1895_v50 = vpack.c.bf16 %v1881_v49, %v1880_v17  ;;  %v1748_v57 = vadd.f32 %v1732_v53, %v1650_v48  ;;  %v1638_v17 = vmul.f32 %v3091_v32, %v1592_v24  ;;  %v1404_v55 = vpop.f32.mrf.mxu0 }
 0x1fc   : > { %1983 = vmatmul.bf16.gmra.mxu1 %v1895_v50  ;;  %v1846_v3 = vadd.f32 %v1830_v1, %v1748_v57  ;;  %v1803_v57 = vpop.permute.xlu2 %1802 }
 0x1fd   : > { %v1488_v59 = vpop.f32.mrf.mxu2  ;;  %v1316_v28 = vpop.f32.mrf.mxu3 }
 0x1fe   : > { %v1521_v63 = vadd.f32 %v1488_v59, %v1392_v56  ;;  %v1866_v9 = vadd.f32 %v3121_v58, %v1846_v3  ;;  %v1402_v59 = vadd.f32 %v1401_v33, %v1316_v28  ;;  %v1701_v1 = vpop.permute.xlu0 %1700  ;;  %v1612_v5 = vpop.permute.xlu1 %1611  ;;  %v1641_v33 = vmul.f32 %v3091_v32, %v1607_v46 }
 0x1ff   : > { %v1737_v3 = vmul.f32 %v3100_v60, %v1701_v1  ;;  %v1642_v46 = vmul.f32 %v3091_v32, %v1612_v5 }
 0x200   : > { %v1651_v44 = vadd.f32 %v1635_v62, %v1521_v63  ;;  %v1882_v18 = vmax.f32 %v1866_v9, 0.0 }
 0x202   : > { %v1749_v11 = vadd.f32 %v1733_v2, %v1651_v44  ;;  %v1639_v2 = vmul.f32 %v3091_v32, %v3147_v54  ;;  %v1834_v44 = vmul.f32 %v3107_v43, %v1795_v61  ;;  %v1406_v7 = vpop.f32.mrf.mxu0  ;;  %v1640_v54 = vmul.f32 %v3091_v32, %v1602_v27 }
 0x203   : > { %v1836_v27 = vmul.f32 %v3107_v43, %v1803_v57 }
 0x204   : > { %v1847_v8 = vadd.f32 %v1831_v0, %v1749_v11 }
 0x205   : > { %v1491_v30 = vpop.f32.mrf.mxu2  ;;  %v1319_v53 = vpop.f32.mrf.mxu3 }
 0x206   : > { %v1522_v4 = vadd.f32 %v1491_v30, %v1395_v6  ;;  %v1867_v37 = vadd.f32 %v3121_v58, %v1847_v8  ;;  %v1405_v30 = vadd.f32 %v1404_v55, %v1319_v53 }
 0x208   : > { %v1652_v16 = vadd.f32 %v1636_v12, %v1522_v4  ;;  %v1883_v19 = vmax.f32 %v1867_v37, 0.0 }
 0x20a   : > { %v1896_v10 = vpack.c.bf16 %v1883_v19, %v1882_v18  ;;  %v1750_v25 = vadd.f32 %v1734_v20, %v1652_v16  ;;  %v1617_v16 = vpop.permute.xlu2 %1616  ;;  %v1705_v19 = vpop.permute.xlu0 %1704 }
 0x20c   : > { %1988 = vmatmul.bf16.gmra.mxu1 %v1896_v10  ;;  %v1848_v38 = vadd.f32 %v1832_v29, %v1750_v25  ;;  %v1409_v29 = vpop.f32.mrf.mxu0 }
 0x20d   : > { %v1493_v42 = vpop.f32.mrf.mxu2  ;;  %v1321_v8 = vpop.f32.mrf.mxu3 }
 0x20e   : > { %v1523_v31 = vadd.f32 %v1493_v42, %v1397_v21  ;;  %v1868_v47 = vadd.f32 %v3121_v58, %v1848_v38  ;;  %v1738_v21 = vmul.f32 %v3100_v60, %v1705_v19  ;;  %v1407_v28 = vadd.f32 %v1406_v7, %v1321_v8 }
 0x210   : > { %v1653_v35 = vadd.f32 %v1637_v22, %v1523_v31  ;;  %v1884_v50 = vmax.f32 %v1868_v47, 0.0  ;;  %v1713_v22 = vpop.permute.xlu1 %1712 }
 0x212   : > { %v1751_v39 = vadd.f32 %v1735_v34, %v1653_v35  ;;  %v1807_v35 = vpop.permute.xlu0 %1806  ;;  %v1717_v38 = vpop.permute.xlu2 %1716 }
 0x213   : > { %v1741_v8 = vmul.f32 %v3100_v60, %v1717_v38 }
 0x214   : > { %v1849_v41 = vadd.f32 %v1833_v14, %v1751_v39  ;;  %v1739_v14 = vmul.f32 %v3100_v60, %v1709_v51  ;;  %v1837_v39 = vmul.f32 %v3107_v43, %v1807_v35  ;;  %v1740_v51 = vmul.f32 %v3100_v60, %v1713_v22 }
 0x215   : > { %v1496_v48 = vpop.f32.mrf.mxu2  ;;  %v1324_v25 = vpop.f32.mrf.mxu3 }
 0x216   : > { %v1524_v23 = vadd.f32 %v1496_v48, %v1400_v40  ;;  %v1869_v49 = vadd.f32 %v3121_v58, %v1849_v41  ;;  %v1410_v47 = vadd.f32 %v1409_v29, %v1324_v25 }
 0x218   : > { %v1654_v13 = vadd.f32 %v1638_v17, %v1524_v23  ;;  %v1885_v52 = vmax.f32 %v1869_v49, 0.0  ;;  %v1815_v48 = vpop.permute.xlu1 %1814 }
 0x219   : > { %v1839_v7 = vmul.f32 %v3107_v43, %v1815_v48 }
 0x21a   : > { %v1897_v56 = vpack.c.bf16 %v1885_v52, %v1884_v50  ;;  %v1752_v62 = vadd.f32 %v1736_v36, %v1654_v13  ;;  %v1411_v52 = vpop.f32.mrf.mxu0  ;;  %v1622_v57 = vpop.permute.xlu2 %1621 }
 0x21c   : > { %1993 = vmatmul.bf16.gmra.mxu1 %v1897_v56  ;;  %v1850_v6 = vadd.f32 %v1834_v44, %v1752_v62  ;;  %v1811_v62 = vpop.permute.xlu0 %1810  ;;  %v1643_v44 = vmul.f32 %v3091_v32, %v1617_v16  ;;  %v1644_v16 = vmul.f32 %v3091_v32, %v1622_v57 }
 0x21d   : > { %v1498_v63 = vpop.f32.mrf.mxu2  ;;  %v1326_v49 = vpop.f32.mrf.mxu3 }
 0x21e   : > { %v1525_v0 = vadd.f32 %v1498_v63, %v1402_v59  ;;  %v1870_v4 = vadd.f32 %v3121_v58, %v1850_v6  ;;  %v1412_v1 = vadd.f32 %v1411_v52, %v1326_v49 }
 0x220   : > { %v1655_v11 = vadd.f32 %v1639_v2, %v1525_v0  ;;  %v1886_v20 = vmax.f32 %v1870_v4, 0.0 }
 0x222   : > { %v1753_v9 = vadd.f32 %v1737_v3, %v1655_v11  ;;  %v1838_v3 = vmul.f32 %v3107_v43, %v1811_v62  ;;  %v1721_v11 = vpop.permute.xlu1 %1720 }
 0x224   : > { %v1851_v12 = vadd.f32 %v1835_v26, %v1753_v9  ;;  %v1414_v9 = vpop.f32.mrf.mxu0  ;;  %v1627_v25 = vpop.permute.xlu0 %1626 }
 0x225   : > { %v1501_v37 = vpop.f32.mrf.mxu2  ;;  %v1329_v5 = vpop.f32.mrf.mxu3 }
 0x226   : > { %v1526_v61 = vadd.f32 %v1501_v37, %v1405_v30  ;;  %v1871_v18 = vadd.f32 %v3121_v58, %v1851_v12  ;;  %v1725_v12 = vpop.permute.xlu2 %1724  ;;  %v1415_v4 = vadd.f32 %v1414_v9, %v1329_v5 }
 0x228   : > { %v1656_v45 = vadd.f32 %v1640_v54, %v1526_v61  ;;  %v1887_v10 = vmax.f32 %v1871_v18, 0.0 }
 0x22a   : > { %v1898_v15 = vpack.c.bf16 %v1887_v10, %v1886_v20  ;;  %v1754_v42 = vadd.f32 %v1738_v21, %v1656_v45  ;;  %v1742_v45 = vmul.f32 %v3100_v60, %v1721_v11  ;;  %v1819_v10 = vpop.permute.xlu1 %1818 }
 0x22c   : > { %1998 = vmatmul.bf16.gmra.mxu1 %v1898_v15  ;;  %v1852_v40 = vadd.f32 %v1836_v27, %v1754_v42  ;;  %v1416_v42 = vpop.f32.mrf.mxu0  ;;  %v1645_v27 = vmul.f32 %v3091_v32, %v1627_v25 }
 0x22d   : > { %v1503_v31 = vpop.f32.mrf.mxu2  ;;  %v1331_v22 = vpop.f32.mrf.mxu3 }
 0x22e   : > { %v1527_v34 = vadd.f32 %v1503_v31, %v1407_v28  ;;  %v1872_v23 = vadd.f32 %v3121_v58, %v1852_v40  ;;  %v1417_v29 = vadd.f32 %v1416_v42, %v1331_v22  ;;  %v1823_v35 = vpop.permute.xlu2 %1822 }
 0x22f   : > { %v1841_v40 = vmul.f32 %v3107_v43, %v1823_v35 }
 0x230   : > { %v1657_v24 = vadd.f32 %v1641_v33, %v1527_v34  ;;  %v1888_v36 = vmax.f32 %v1872_v23, 0.0  ;;  %v1840_v33 = vmul.f32 %v3107_v43, %v1819_v10 }
 0x232   : > { %v1755_v41 = vadd.f32 %v1739_v14, %v1657_v24  ;;  %v1743_v14 = vmul.f32 %v3100_v60, %v1725_v12  ;;  %v2461_v60 = vld [vmem:[%s3276_s13] ss:$0 sm:$0xff] }
 0x234   : > { %v1853_v17 = vadd.f32 %v1837_v39, %v1755_v41 }
 0x235   : > { %v1506_v53 = vpop.f32.mrf.mxu2 }
 0x236   : > { %v1528_v13 = vadd.f32 %v1506_v53, %v1410_v47  ;;  %v1873_v50 = vadd.f32 %v3121_v58, %v1853_v17 }
 0x238   : > { %v1658_v55 = vadd.f32 %v1642_v46, %v1528_v13  ;;  %v1889_v56 = vmax.f32 %v1873_v50, 0.0 }
 0x23a   : > { %v1899_v59 = vpack.c.bf16 %v1889_v56, %v1888_v36  ;;  %v1756_v63 = vadd.f32 %v1740_v51, %v1658_v55 }
 0x23c   : > { %2003 = vmatmul.bf16.gmra.mxu1 %v1899_v59  ;;  %v1854_v6 = vadd.f32 %v1838_v3, %v1756_v63 }
 0x23d   : > { %v1508_v2 = vpop.f32.mrf.mxu2 }
 0x23e   : > { %v1529_v0 = vadd.f32 %v1508_v2, %v1412_v1  ;;  %v1874_v54 = vadd.f32 %v3121_v58, %v1854_v6 }
 0x240   : > { %v1659_v26 = vadd.f32 %v1643_v44, %v1529_v0  ;;  %v1890_v21 = vmax.f32 %v1874_v54, 0.0 }
 0x242   : > { %v1757_v30 = vadd.f32 %v1741_v8, %v1659_v26 }
 0x244   : > { %v1855_v37 = vadd.f32 %v1839_v7, %v1757_v30 }
 0x245   : > { %v1511_v61 = vpop.f32.mrf.mxu2 }
 0x246   : > { %v1530_v18 = vadd.f32 %v1511_v61, %v1415_v4  ;;  %v1875_v19 = vadd.f32 %v3121_v58, %v1855_v37 }
 0x248   : > { %v1660_v20 = vadd.f32 %v1644_v16, %v1530_v18  ;;  %v1891_v15 = vmax.f32 %v1875_v19, 0.0 }
 0x24a   : > { %v1900_v28 = vpack.c.bf16 %v1891_v15, %v1890_v21  ;;  %v1758_v31 = vadd.f32 %v1742_v45, %v1660_v20 }
 0x24c   : > { %2008 = vmatmul.bf16.gmra.mxu1 %v1900_v28  ;;  %v1856_v39 = vadd.f32 %v1840_v33, %v1758_v31 }
 0x24d   : > { %v1513_v34 = vpop.f32.mrf.mxu2 }
 0x24e   : > { %v1531_v38 = vadd.f32 %v1513_v34, %v1417_v29  ;;  %v1876_v47 = vadd.f32 %v3121_v58, %v1856_v39 }
 0x250   : > { %v1661_v24 = vadd.f32 %v1645_v27, %v1531_v38  ;;  %v1892_v23 = vmax.f32 %v1876_v47, 0.0 }
 0x252   : > { %v1759_v41 = vadd.f32 %v1743_v14, %v1661_v24 }
 0x254   : > { %v1857_v48 = vadd.f32 %v1841_v40, %v1759_v41 }
 0x256   : > { %v1877_v17 = vadd.f32 %v3121_v58, %v1857_v48 }
 0x258   : > { %v1893_v49 = vmax.f32 %v1877_v17, 0.0 }
 0x25a   : > { %v1901_v32 = vpack.c.bf16 %v1893_v49, %v1892_v23 }
 0x25c   : > { %2013 = vmatmul.bf16.gmra.mxu1 %v1901_v32 }
 0x269   : > { %v1979_v53 = vpop.f32.mrf.mxu1 }
 0x26a   : > { %v1980_v46 = vadd.f32 %v2461_v60, %v1979_v53 }
 0x26c   : > { %2019 = vst [vmem:[%s3211_s21] sm:$0xff] %v1980_v46 }
 0x271   : > { %v1981_v43 = vpop.f32.mrf.mxu1 }
 0x272   : > { %v1982_v58 = vadd.f32 %v2461_v60, %v1981_v43 }
 0x274   : > { %2020 = vst [vmem:[%s3211_s21 + $0x8] sm:$0xff] %v1982_v58 }
 0x279   : > { %v1984_v13 = vpop.f32.mrf.mxu1 }
 0x27a   : > { %v1985_v50 = vadd.f32 %v2461_v60, %v1984_v13 }
 0x27c   : > { %2021 = vst [vmem:[%s3211_s21 + $0x10] sm:$0xff] %v1985_v50 }
 0x281   : > { %v1986_v52 = vpop.f32.mrf.mxu1 }
 0x282   : > { %v1987_v51 = vadd.f32 %v2461_v60, %v1986_v52 }
 0x284   : > { %2022 = vst [vmem:[%s3211_s21 + $0x18] sm:$0xff] %v1987_v51 }
 0x289   : > { %v1989_v55 = vpop.f32.mrf.mxu1 }
 0x28a   : > { %v1990_v36 = vadd.f32 %v2461_v60, %v1989_v55 }
 0x28c   : > { %2023 = vst [vmem:[%s3211_s21 + $0x20] sm:$0xff] %v1990_v36 }
 0x291   : > { %v1991_v56 = vpop.f32.mrf.mxu1 }
 0x292   : > { %v1992_v57 = vadd.f32 %v2461_v60, %v1991_v56 }
 0x294   : > { %2024 = vst [vmem:[%s3211_s21 + $0x28] sm:$0xff] %v1992_v57 }
 0x299   : > { %v1994_v59 = vpop.f32.mrf.mxu1 }
 0x29a   : > { %v1995_v62 = vadd.f32 %v2461_v60, %v1994_v59 }
 0x29c   : > { %2025 = vst [vmem:[%s3211_s21 + $0x30] sm:$0xff] %v1995_v62 }
 0x2a1   : > { %v1996_v1 = vpop.f32.mrf.mxu1 }
 0x2a2   : > { %v1997_v63 = vadd.f32 %v2461_v60, %v1996_v1 }
 0x2a4   : > { %2026 = vst [vmem:[%s3211_s21 + $0x38] sm:$0xff] %v1997_v63 }
 0x2a9   : > { %v1999_v2 = vpop.f32.mrf.mxu1 }
 0x2aa   : > { %v2000_v44 = vadd.f32 %v2461_v60, %v1999_v2 }
 0x2ac   : > { %2027 = vst [vmem:[%s3211_s21 + $0x40] sm:$0xff] %v2000_v44 }
 0x2b1   : > { %v2001_v3 = vpop.f32.mrf.mxu1 }
 0x2b2   : > { %v2002_v0 = vadd.f32 %v2461_v60, %v2001_v3 }
 0x2b4   : > { %2028 = vst [vmem:[%s3211_s21 + $0x48] sm:$0xff] %v2002_v0 }
 0x2b9   : > { %v2004_v11 = vpop.f32.mrf.mxu1 }
 0x2ba   : > { %v2005_v5 = vadd.f32 %v2461_v60, %v2004_v11 }
 0x2bc   : > { %2029 = vst [vmem:[%s3211_s21 + $0x50] sm:$0xff] %v2005_v5 }
 0x2c1   : > { %v2006_v6 = vpop.f32.mrf.mxu1 }
 0x2c2   : > { %v2007_v8 = vadd.f32 %v2461_v60, %v2006_v6 }
 0x2c4   : > { %2030 = vst [vmem:[%s3211_s21 + $0x58] sm:$0xff] %v2007_v8 }
 0x2c9   : > { %v2009_v26 = vpop.f32.mrf.mxu1 }
 0x2ca   : > { %v2010_v9 = vadd.f32 %v2461_v60, %v2009_v26 }
 0x2cc   : > { %2031 = vst [vmem:[%s3211_s21 + $0x60] sm:$0xff] %v2010_v9 }
 0x2d1   : > { %v2011_v7 = vpop.f32.mrf.mxu1 }
 0x2d2   : > { %v2012_v30 = vadd.f32 %v2461_v60, %v2011_v7 }
 0x2d4   : > { %2032 = vst [vmem:[%s3211_s21 + $0x68] sm:$0xff] %v2012_v30 }
 0x2d9   : > { %v2014_v12 = vpop.f32.mrf.mxu1 }
 0x2da   : > { %v2015_v4 = vadd.f32 %v2461_v60, %v2014_v12 }
 0x2dc   : > { %2033 = vst [vmem:[%s3211_s21 + $0x70] sm:$0xff] %v2015_v4 }
 0x2e1   : > { %v2016_v37 = vpop.f32.mrf.mxu1 }
 0x2e2   : > { %v2017_v54 = vadd.f32 %v2461_v60, %v2016_v37 }
 0x2e4   : > { %2034 = vst [vmem:[%s3211_s21 + $0x78] sm:$0xff] %v2017_v54 }
 0x2e5   : > { %2489 = shalt.err (!%p2486_p3)
}
 0x2e6   : > { %s2530_s22 = smov 128   ;;  %s2531_s21 = smov 8  }
 0x2e7   : > { %2367 = dma.vmem_to_hbm [thread:$0]  (%p2645_p5), %s2049_s27, 2048, %s2051_s18, %s2036_s26, %s2530_s22, %s2530_s22, %s2531_s21  }
 0x2e8 PF: > { %p2373_p4 = scmp.ge.s32.totalorder %s2524_s16, 2  ;;  %s2065_s2 = sand.u32 1, %s2512_s29  }
 0x2e9   : > { %s2066_s1 = scalar_lea.sflag [#allocation3], %s2065_s2 }
 0x2ea   : > { %p2370_p7 = pnand %p2373_p4, %p2649_p6 }
 0x2ec   : > { %p2371_p8 = pneg %p2370_p7 }
 0x2ee   : > { %2507 = dma.done.wait (%p2371_p8), %s2066_s1, 2048  }
 0x2ef   : > { %2509 = vsyncadd (%p2371_p8), %s2066_s1, 4294965248  ;;  %s3287_s28 = sld [smem:[#allocation5_spill]]  ;;  %p24_p9 = scmp.ge.s32.totalorder %s2632_s19, 4  }
 0x2f0   : > { %s3288_s29 = smov %s2516_s30  ;;  %s3289_s30 = smov %s2520_s15 }
 0x2f1   : > { %s3291_s16 = smov %s2632_s19  ;;  %26 = sbr.rel (!%p24_p9) target bundleno = 7 (0x7), region = 120 }
 0x2f5   : > { %s3290_s15 = smov %s3287_s28 }
 0x2f6   :  { %2072 = vsyncpa [#allocation3], 1 }
 0x2f7   :  { %2074 = vsyncpa [#allocation3 + $0x1], 1 }

</bundles_post_ra>
